<compile_context>
chip_gen: v6e
topology: v6e:2x2x1
jax: 0.10.0
libtpu: 0.0.40
codegen_flags: <defaults>
</compile_context>

<pallas_src>
import math

import numpy as np
import jax
import jax.numpy as jnp
from jax import lax
from jax.experimental import pallas as pl
from jax.experimental.pallas import tpu as pltpu

KERNEL_HALF_SIZE = 3                      # P
KERNEL_SIZE = 2 * KERNEL_HALF_SIZE + 1    # 7
SIGMA = 1.6


def make_gaussian_taps_1d(kernel_half_size=KERNEL_HALF_SIZE, sigma=SIGMA):
    """Normalized 1D Gaussian taps (float64). The module's 3D kernel is the
    normalized outer product of three 1D Gaussians, so the separable form is
    exact up to rounding."""
    k = 2 * kernel_half_size + 1
    coords = np.arange(k, dtype=np.float64)
    mean = (k - 1) / 2.0
    g = (1.0 / (sigma * math.sqrt(2.0 * math.pi))) * np.exp(
        -(((coords - mean) / sigma) ** 2) / 2.0)
    return g / g.sum()  # (7,)


def make_gaussian_kernel_3d(kernel_half_size=KERNEL_HALF_SIZE, sigma=SIGMA):
    """Full (7,7,7) kernel, as GaussianSmoothing.__init__ builds it (reference only)."""
    g = make_gaussian_taps_1d(kernel_half_size, sigma)
    ker = g[:, None, None] * g[None, :, None] * g[None, None, :]
    ker = ker / ker.sum()
    return ker.astype(np.float32)


def _banded_toeplitz(n, taps):
    """(n, n) matrix B with B[i, j] = taps[j - i + P] for |j - i| <= P, else 0.
    Applying B to a length-n vector == 'same' 1D conv with zero padding."""
    P = len(taps) // 2
    B = np.zeros((n, n), np.float64)
    for o in range(-P, P + 1):
        idx = np.arange(max(0, -o), min(n, n - o))
        B[idx, idx + o] = taps[P + o]
    return B


def _gauss_mxu_kernel(bhw_ref, bd_ref, x_ref, o_ref):
    """One volume per grid step.

    bhw_ref : (HW, HW) banded kron(B_H, B_W) matrix in VMEM (grid-invariant)
    bd_ref  : (D, D)   banded Toeplitz matrix for the depth axis (grid-invariant)
    x_ref   : (D, HW)  input slab (lane axis = flattened H*W)
    o_ref   : (D, HW)  output slab
    """
    x = x_ref[...]  # (D, HW) f32

    # Fused H+W pass on the MXU: y[d, j] = sum_k x[d, k] * B_HW[j, k]
    y = lax.dot_general(
        x, bhw_ref[...],
        dimension_numbers=(((1,), (1,)), ((), ())),
        preferred_element_type=jnp.float32,
        precision=lax.Precision.HIGHEST)

    # D pass on the MXU: out[d, j] = sum_k B_D[d, k] * y[k, j]
    o_ref[...] = lax.dot_general(
        bd_ref[...], y,
        dimension_numbers=(((1,), (0,)), ((), ())),
        preferred_element_type=jnp.float32,
        precision=lax.Precision.HIGHEST)


def gaussian_smoothing_3d(x):
    """x: (N, C, D, H, W) -> (N, C, D, H, W) float32, same-padded 7^3 Gaussian blur.

    Channels are folded into the batch (the blur is depthwise with identical
    weights per channel), so the grid is (N*C,) volumes, one per step.
    """
    N, C, D, H, W = x.shape
    x = x.astype(jnp.float32)
    HW = H * W
    NB = N * C

    # The fused (HW, HW) operator is sized for small volumes (HW <= ~1K lanes).
    # TODO(synk): for large volumes (e.g. 128^3), tile H/W with halos (or fall back
    # to pltpu.roll-based separable VPU passes) and size tiles against v7x's 64 MiB VMEM.
    assert HW <= 1024, "fused B_HW path is sized for small volumes"

    taps = make_gaussian_taps_1d()
    B_W = _banded_toeplitz(W, taps)
    B_H = _banded_toeplitz(H, taps)
    B_D = _banded_toeplitz(D, taps)
    # Flattened index is h*W + w, so the fused operator is kron(B_H, B_W).
    B_HW = jnp.asarray(np.kron(B_H, B_W), dtype=jnp.float32)   # (HW, HW)
    B_Dj = jnp.asarray(B_D, dtype=jnp.float32)                 # (D, D)

    xv = x.reshape(NB, D, HW)  # lane-dense view (metadata-only reshape)

    # Advisory cost: two matmuls per volume, tensor read+write once.
    flops = NB * (2 * D * HW * HW + 2 * D * D * HW)
    bytes_accessed = 2 * NB * D * HW * 4 + (HW * HW + D * D) * 4
    cost = pl.CostEstimate(flops=flops, transcendentals=0,
                           bytes_accessed=bytes_accessed)

    out = pl.pallas_call(
        _gauss_mxu_kernel,
        out_shape=jax.ShapeDtypeStruct((NB, D, HW), jnp.float32),
        grid=(NB,),
        in_specs=[
            # Grid-invariant operators: block index never changes -> fetched once.
            pl.BlockSpec((HW, HW), lambda i: (0, 0)),
            pl.BlockSpec((D, D), lambda i: (0, 0)),
            # One (D, HW) volume per grid step (batch dim squeezed away).
            pl.BlockSpec((None, D, HW), lambda i: (i, 0, 0)),
        ],
        out_specs=pl.BlockSpec((None, D, HW), lambda i: (i, 0, 0)),
        compiler_params=pltpu.CompilerParams(
            dimension_semantics=("parallel",)),
        cost_estimate=cost,
    )(B_HW, B_Dj, xv)

    return out.reshape(N, C, D, H, W)


def _reference(x):
    """Pure-JAX reference: nn.Conv3d with the full 3D Gaussian weight, bias=0."""
    ker = jnp.asarray(make_gaussian_kernel_3d())[None, None]  # OIDHW
    p = KERNEL_HALF_SIZE
    N, C, D, H, W = x.shape
    xf = x.astype(jnp.float32).reshape(N * C, 1, D, H, W)
    y = lax.conv_general_dilated(
        xf, ker,
        window_strides=(1, 1, 1),
        padding=((p, p), (p, p), (p, p)),
        dimension_numbers=("NCDHW", "OIDHW", "NCDHW"),
        precision=lax.Precision.HIGHEST,
    )
    return y.reshape(N, C, D, H, W)


if __name__ == "__main__":
    key = jax.random.PRNGKey(0)
    N, C, D, H, W = 2, 1, 16, 16, 16
    x = jax.random.normal(key, (N, C, D, H, W), dtype=jnp.float32)

    out = jax.block_until_ready(gaussian_smoothing_3d(x))
    ref = jax.block_until_ready(_reference(x))

    assert out.shape == (N, C, D, H, W)
    assert out.dtype == jnp.float32
    max_err = float(jnp.max(jnp.abs(out - ref)))
    assert max_err < 1e-4, f"mismatch vs reference conv: {max_err}"

    print("KERNEL_OK")
</pallas_src>

<mosaic_0001>
module attributes {stable_mosaic.version = 11 : i64} {
  func.func @_gauss_mxu_kernel(%arg0: i32, %arg1: memref<256x256xf32, #tpu.memory_space<vmem>>, %arg2: memref<16x16xf32, #tpu.memory_space<vmem>>, %arg3: memref<1x16x256xf32, #tpu.memory_space<vmem>>, %arg4: memref<1x16x256xf32, #tpu.memory_space<vmem>>) attributes {dimension_semantics = [#tpu.dimension_semantics<parallel>], iteration_bounds = array<i64: 2>, scalar_prefetch = 0 : i64, scratch_operands = 0 : i64, tpu.core_type = #tpu.core_type<tc>, window_params = [{pipeline_mode = #tpu.pipeline_mode<synchronous>, transform_indices = @transform_0, window_bounds = array<i64: 256, 256>}, {pipeline_mode = #tpu.pipeline_mode<synchronous>, transform_indices = @transform_1, window_bounds = array<i64: 16, 16>}, {transform_indices = @transform_2, window_bounds = array<i64: 1, 16, 256>}, {transform_indices = @transform_3, window_bounds = array<i64: 1, 16, 256>}]} {
    %c0 = arith.constant 0 : index
    %c0_0 = arith.constant 0 : index
    %c0_1 = arith.constant 0 : index
    %0 = vector.load %arg3[%c0, %c0_0, %c0_1] : memref<1x16x256xf32, #tpu.memory_space<vmem>>, vector<1x16x256xf32>
    %1 = vector.shape_cast %0 : vector<1x16x256xf32> to vector<16x256xf32>
    %c0_2 = arith.constant 0 : index
    %c0_3 = arith.constant 0 : index
    %2 = vector.load %arg1[%c0_2, %c0_3] : memref<256x256xf32, #tpu.memory_space<vmem>>, vector<256x256xf32>
    %cst = arith.constant dense<0.000000e+00> : vector<16x256xf32>
    %3 = tpu.matmul %1, %2, %cst {dimension_numbers = #tpu.dot_dimension_numbers<[1], [1], [0], [0], [0, 0, 1, 0], [], []>, precision = #tpu.contract_precision<fp32>} : vector<16x256xf32>, vector<256x256xf32>, vector<16x256xf32> -> vector<16x256xf32>
    %c0_4 = arith.constant 0 : index
    %c0_5 = arith.constant 0 : index
    %4 = vector.load %arg2[%c0_4, %c0_5] : memref<16x16xf32, #tpu.memory_space<vmem>>, vector<16x16xf32>
    %cst_6 = arith.constant dense<0.000000e+00> : vector<16x256xf32>
    %5 = tpu.matmul %4, %3, %cst_6 {dimension_numbers = #tpu.dot_dimension_numbers<[1], [0], [0], [1], [0, 0, 1, 1], [], []>, precision = #tpu.contract_precision<fp32>} : vector<16x16xf32>, vector<16x256xf32>, vector<16x256xf32> -> vector<16x256xf32>
    %c0_7 = arith.constant 0 : index
    %c0_8 = arith.constant 0 : index
    %c0_9 = arith.constant 0 : index
    %6 = vector.load %arg4[%c0_7, %c0_8, %c0_9] : memref<1x16x256xf32, #tpu.memory_space<vmem>>, vector<1x16x256xf32>
    %7 = vector.shape_cast %6 : vector<1x16x256xf32> to vector<16x256xf32>
    %8 = vector.shape_cast %5 : vector<16x256xf32> to vector<1x16x256xf32>
    tpu.vector_store %arg4[%c0_7, %c0_8, %c0_9], %8 {strides = array<i32>} : memref<1x16x256xf32, #tpu.memory_space<vmem>>, vector<1x16x256xf32>,
    return
  }
  func.func @transform_0(%arg0: i32) -> (i32, i32) {
    %c0_i32 = arith.constant 0 : i32
    %c0_i32_0 = arith.constant 0 : i32
    %c0_i32_1 = arith.constant 0 : i32
    return %c0_i32, %c0_i32_0 : i32, i32
  }
  func.func @transform_1(%arg0: i32) -> (i32, i32) {
    %c0_i32 = arith.constant 0 : i32
    %c0_i32_0 = arith.constant 0 : i32
    %c0_i32_1 = arith.constant 0 : i32
    return %c0_i32, %c0_i32_0 : i32, i32
  }
  func.func @transform_2(%arg0: i32) -> (i32, i32, i32) {
    %c0_i32 = arith.constant 0 : i32
    %c0_i32_0 = arith.constant 0 : i32
    %c0_i32_1 = arith.constant 0 : i32
    return %arg0, %c0_i32, %c0_i32_0 : i32, i32, i32
  }
  func.func @transform_3(%arg0: i32) -> (i32, i32, i32) {
    %c0_i32 = arith.constant 0 : i32
    %c0_i32_0 = arith.constant 0 : i32
    %c0_i32_1 = arith.constant 0 : i32
    return %arg0, %c0_i32, %c0_i32_0 : i32, i32, i32
  }
}

</mosaic_0001>

<bundles_post_ra>
// kernel: tpu_custom_call.1
= control target key start
LH: loop header
LB: loop body
LE: loop exit
PB: predicated region body
PF: predicated region fallthrough
CT: control target
= control target key end

     0   :  { %s3848_s0 = inlined_call_operand.hbm [shape: f32[256,256], index: 0, kind: input, shape index: {}]   ;;  %s3849_s1 = inlined_call_operand.hbm [shape: f32[16,16], index: 1, kind: input, shape index: {}]   ;;  %s3850_s2 = inlined_call_operand.hbm [shape: f32[2,16,256], index: 2, kind: input, shape index: {}]   ;;  %s3851_s3 = inlined_call_operand.hbm [shape: f32[2,16,256], index: 3, kind: output, shape index: {}]  }
   0x1   :  { %4066 = sst [smem:[#allocation108_spill]] %s3848_s0 }
   0x2   :  { %8 = vsyncpa [#allocation3], 0 }
   0x3   :  { %9 = vsyncpa [#allocation6], 0 }
   0x4   :  { %10 = vsyncpa [#allocation4], 0 }
   0x5   :  { %12 = vsyncpa [#allocation4 + $0x1], 0  ;;  %s2568_s12 = smov 0   ;;  %s2570_s13 = smov 0  }
   0x6   :  { %s2572_s14 = smov 0   ;;  %s2574_s15 = smov 0  }
   0x7 LB: > { %s2589_s16 = sadd.s32 4294967295, %s2535_s15   ;;  %s2289_s17 = sadd.s32 4294967294, %s2535_s15   ;;  %s2535_s15 = sphi %s2574_s15, %s4457_s15   ;;  %s2531_s14 = sphi %s2572_s14, %s4456_s14   ;;  %s2527_s13 = sphi %s2570_s13, %s4455_s13   ;;  %s2523_s12 = sphi %s2568_s12, %s4454_s12  }
   0x8   : > { %s2593_s18 = sadd.s32 1, %s2535_s15   ;;  %s67_s19 = sadd.s32 1, %s2531_s14 }
   0x9   : > { %s64_s20 = ssub.s32 %s2535_s15, %s2593_s18  ;;  %p74_p0 = scmp.ne.s32.totalorder %s2531_s14, %s2527_s13 }
   0xa   : > { %p65_p1 = scmp.eq.s32.totalorder %s64_s20, 0  ;;  %p75_p2 = scmp.eq.s32.totalorder %s2535_s15, 0 }
   0xb   : > { %p80_p3 = scmp.ne.s32.totalorder %s2527_s13, %s2523_s12  ;;  %p3853_p4 = scmp.eq.s32.totalorder %s2589_s16, 0 }
   0xc   : > { %s2605_s21 = scalar_select %p65_p1, %s2531_s14, %s67_s19  }
   0xd   : > { %p2607_p5 = por %p75_p2, %p74_p0  ;;  %p2613_p6 = por %p3853_p4, %p80_p3 }
   0xe   : > { %p104_p7 = scmp.eq.s32.totalorder %s2589_s16, 1  ;;  %p110_p8 = scmp.eq.s32.totalorder %s2289_s17, 1 }
   0xf   : > { %s4068_s23 = scalar_select %p2613_p6, 1, 0 }
  0x10   : > { %p2290_p9 = scmp.ge.s32.totalorder %s2535_s15, 1  ;;  %p117_p10 = scmp.lt.s32.totalorder %s2535_s15, 3 }
  0x11   : > { %p2620_p11 = por %p104_p7, %p74_p0  ;;  %p2624_p12 = por %p110_p8, %p80_p3 }
  0x12   : > { %p2628_p13 = pnand %p2290_p9, %p117_p10  ;;  %s2537_s27 = smov [#allocation2]  }
  0x13   : > { %s4069_s24 = scalar_select %p2620_p11, 1, 0 }
  0x14   : > { %s4070_s25 = scalar_select %p2624_p12, 1, 0 }
  0x15   : > { %s4071_s26 = scalar_select %p2628_p13, 1, 0 }
  0x16   : > { %p2321_p1 = pneg %p2628_p13  ;;  %s129_s28 = sshll.u32 %s2537_s27, 4  ;;  %s130_s28 = int_to_ptr.vmem [resolvable:$true] %s129_s28 }
  0x17   : > { %p2338_p3 = scmp.lt.s32.totalorder %s2535_s15, 2  ;;  %s2538_s30 = smov [#allocation5]  }
  0x18   : > { %p2636_p2 = pnand %p2321_p1, %p3853_p4  ;;  %s142_s4 = sshll.u32 %s2538_s30, 4  ;;  %s143_s4 = int_to_ptr.vmem [resolvable:$true] %s142_s4 }
  0x19   : > { %s2394_s5 = scalar_lea.vmem %s130_s28, 8192  ;;  %p2402_p12 = scmp.lt.s32.totalorder %s130_s28, %s130_s28 }
  0x1a   : > { %p2385_p7 = pneg %p2636_p2  ;;  %p2395_p8 = scmp.ne.s32.totalorder %s130_s28, %s2394_s5 }
  0x1b   : > { %p2403_p11 = scmp.lt.s32.totalorder %s2394_s5, %s2394_s5 }
  0x1c   : > { %p2397_p9 = pnand %p2395_p8, %p2385_p7 }
  0x1d   : > { %p2404_p1 = por %p2403_p11, %p2402_p12 }
  0x1e   : > { %p2398_p10 = pneg %p2397_p9 }
  0x20   : > { %p2405_p4 = pnand %p2404_p1, %p2398_p10 }
  0x22   : > { %2408 = shalt.err (!%p2405_p4)
}
  0x23   : > { %s3854_s6 = smov 256   ;;  %s3855_s7 = smov 16  }
  0x24   : > { %s4073_s0 = sld [smem:[#allocation108_spill]]  ;;  %p2659_p11 = pnand %p2338_p3, %p2607_p5 }
  0x25   : > { %s156_s11 = sand.u32 1, %s2535_s15   ;;  %s2420_s17 = scalar_lea.vmem %s143_s4, 256 }
  0x26   : > { %p2421_p4 = scmp.ne.s32.totalorder %s143_s4, %s2420_s17  ;;  %p2428_p9 = scmp.lt.s32.totalorder %s143_s4, %s143_s4 }
  0x27   : > { %p2429_p10 = scmp.lt.s32.totalorder %s2420_s17, %s2420_s17 }
  0x28   : > { %p2423_p12 = pnand %p2421_p4, %p2385_p7 }
  0x29   : > { %p2430_p1 = por %p2429_p10, %p2428_p9 }
  0x2a   : > { %2324 = dma.hbm_to_vmem [thread:$0]  (!%p2636_p2), %s4073_s0, 8192, %s130_s28, [#allocation3], %s3854_s6, %s3854_s6, %s3855_s7  }
  0x2b   : > { %p2424_p8 = pneg %p2423_p12 }
  0x2d   : > { %p2431_p0 = pnand %p2430_p1, %p2424_p8 }
  0x2f   : > { %2434 = shalt.err (!%p2431_p0)
}
  0x30   : > { %s2541_s19 = smov 128   ;;  %s2542_s20 = smov 8  }
  0x31   : > { %2327 = dma.hbm_to_vmem [thread:$0]  (!%p2636_p2), %s3849_s1, 256, %s143_s4, [#allocation6], %s2541_s19, %s2541_s19, %s2542_s20  }
  0x32   : > { %s158_s28 = sand.u32 1, %s2531_s14   ;;  %s2307_s5 = sshll.u32 %s2535_s15, 9 }
  0x33   : > { %s2294_s30 = sshll.u32 %s158_s28, 5  ;;  %s2677_s17 = scalar_lea.hbm %s3850_s2, %s2307_s5 }
  0x34   : > { %s160_s6 = scalar_lea.vmem [#allocation7], %s2294_s30  ;;  %s2681_s29 = scalar_lea.sflag [#allocation3], %s156_s11 }
  0x35   : > { %s167_s7 = sshll.u32 %s160_s6, 4  ;;  %s2435_s0 = scalar_lea.hbm %s2677_s17, 512  ;;  %s2679_s7 = int_to_ptr.vmem [resolvable:$true] %s167_s7 }
  0x36   : > { %p2436_p5 = scmp.ne.s32.totalorder %s2677_s17, %s2435_s0  ;;  %p2437_p2 = pneg %p2659_p11 }
  0x37   : > { %s2440_s20 = scalar_lea.hbm %s3850_s2, 1024  ;;  %p2441_p7 = scmp.lt.s32.totalorder %s2677_s17, %s3850_s2 }
  0x38   : > { %p2438_p0 = pnand %p2437_p2, %p2436_p5  ;;  %p2442_p4 = scmp.lt.s32.totalorder %s2440_s20, %s2435_s0 }
  0x3a   : > { %p2439_p3 = pneg %p2438_p0  ;;  %p2443_p12 = por %p2442_p4, %p2441_p7 }
  0x3c   : > { %p2444_p8 = pnand %p2443_p12, %p2439_p3 }
  0x3e   : > { %2447 = shalt.err (!%p2444_p8)
}
  0x3f   : > { %s2448_s6 = scalar_lea.vmem %s2679_s7, 512  ;;  %s2543_s11 = smov [#allocation7]  }
  0x40   : > { %p2449_p9 = scmp.ne.s32.totalorder %s2679_s7, %s2448_s6  ;;  %s2453_s28 = sshll.u32 %s2543_s11, 4  ;;  %s2454_s28 = int_to_ptr.vmem [resolvable:$false] %s2453_s28 }
  0x41   : > { %s2455_s30 = scalar_lea.vmem %s2454_s28, 1024  ;;  %p2456_p5 = scmp.lt.s32.totalorder %s2679_s7, %s2454_s28 }
  0x42   : > { %p2451_p10 = pnand %p2449_p9, %p2437_p2  ;;  %p2457_p0 = scmp.lt.s32.totalorder %s2455_s30, %s2448_s6 }
  0x44   : > { %p2452_p1 = pneg %p2451_p10  ;;  %p2458_p6 = por %p2457_p0, %p2456_p5 }
  0x46   : > { %p2459_p13 = pnand %p2458_p6, %p2452_p1 }
  0x48   : > { %2462 = shalt.err (!%p2459_p13)
}
  0x49   : > { %s4075_s0 = smov 16   ;;  %s4076_s5 = smov 256  }
  0x4a   : > { %2331 = dma.hbm_to_vmem [thread:$0]  (!%p2659_p11), %s2677_s17, 512, %s2679_s7, %s2681_s29, %s4076_s5, %s4076_s5, %s4075_s0  }
  0x4b   : > { %p4077_p2 = scmp.ne.s32.totalorder %s4071_s26, 0 }
  0x4d   : > { %179 = sbr.rel (%p4077_p2) target bundleno = 935 (0x3a7), region = 32 }
  0x52   : > { %p4078_p3 = scmp.eq.s32.totalorder %s2589_s16, 0 }
  0x54   : > { %2506 = dma.done.wait (%p4078_p3), [#allocation3], 8192   ;;  %p4079_p7 = pmov %p4078_p3 }
  0x55   : > { %p4080_p6 = pmov %p4078_p3 }
  0x56   : > { %2508 = vsyncadd (%p4079_p7), [#allocation3], 4294959104 }
  0x57   : > { %2510 = dma.done.wait (%p4080_p6), [#allocation6], 256   ;;  %p4081_p13 = pmov %p4078_p3 }
  0x58   : > { %s189_s7 = sand.u32 1, %s2589_s16   ;;  %s191_s10 = sand.u32 1, %s2527_s13  }
  0x59   : > { %2512 = vsyncadd (%p4081_p13), [#allocation6], 4294967040  ;;  %s2719_s26 = sshll.u32 %s191_s10, 5  ;;  %s190_s8 = scalar_lea.sflag [#allocation3], %s189_s7 }
  0x5a   : > { %s2722_s9 = scalar_lea.vmem [#allocation7], %s2719_s26  ;;  %p4082_p11 = scmp.ne.s32.totalorder %s4068_s23, 0 }
  0x5c   : > { %2514 = dma.done.wait (%p4082_p11), %s190_s8, 512  }
  0x5d   : > { %2516 = vsyncadd (%p4082_p11), %s190_s8, 4294966784  ;;  %v251_v0 = vld [vmem:[#allocation2 + $0xf8] sm:$0xff]  ;;  %v250_v1 = vld [vmem:[#allocation2 + $0xf0] sm:$0xff]  ;;  %vm1632_vm0 = vcmask 130048   ;;  %s215_s23 = scalar_lea.vmem [#allocation8], %s2719_s26  ;;  %s2308_s29 = sshll.u32 %s2589_s16, 9 }
  0x5e   : > { %v249_v2 = vld [vmem:[#allocation2 + $0xe8] sm:$0xff]  ;;  %v2728_v3 = vand.u32 4294901760, %v251_v0  ;;  %v2730_v4 = vand.u32 4294901760, %v250_v1  ;;  %v248_v6 = vld [vmem:[#allocation2 + $0xe0] sm:$0xff]  ;;  %v247_v7 = vld [vmem:[#allocation2 + $0xd8] sm:$0xff]  ;;  %s2197_s17 = sshll.u32 %s215_s23, 4  ;;  %s3803_s20 = scalar_lea.hbm %s3851_s3, %s2308_s29  ;;  %s3798_s17 = int_to_ptr.vmem [resolvable:$true] %s2197_s17 }
  0x5f   : > { %v2732_v5 = vand.u32 4294901760, %v249_v2  ;;  %v246_v8 = vld [vmem:[#allocation2 + $0xd0] sm:$0xff]  ;;  %v2734_v9 = vand.u32 4294901760, %v248_v6  ;;  %v2736_v10 = vand.u32 4294901760, %v247_v7  ;;  %v245_v12 = vld [vmem:[#allocation2 + $0xc8] sm:$0xff]  ;;  %v244_v13 = vld [vmem:[#allocation2 + $0xc0] sm:$0xff] }
  0x60   : > { %v2738_v11 = vand.u32 4294901760, %v246_v8  ;;  %v243_v14 = vld [vmem:[#allocation2 + $0xb8] sm:$0xff]  ;;  %285 = vmatprep.subr.mxu0 %v2728_v3  ;;  %v2742_v15 = vsub.f32 %v251_v0, %v2728_v3  ;;  %v2745_v16 = vsub.f32 %v250_v1, %v2730_v4  ;;  %v2747_v17 = vand.u32 4294901760, %v245_v12  ;;  %v242_v19 = vld [vmem:[#allocation2 + $0xb0] sm:$0xff]  ;;  %v241_v27 = vld [vmem:[#allocation2 + $0xa8] sm:$0xff]  ;;  %s3807_s16 = scalar_lea.sflag [#allocation4], %s191_s10 }
  0x61   : > { %v2750_v18 = vsub.f32 %v249_v2, %v2732_v5  ;;  %287 = vmatpush1.xpose.msra.mxu0 %v2730_v4  ;;  %v2753_v20 = vand.u32 4294901760, %v244_v13  ;;  %v2756_v21 = vsub.f32 %v248_v6, %v2734_v9  ;;  %v2759_v22 = vsub.f32 %v247_v7, %v2736_v10  ;;  %v240_v40 = vld [vmem:[#allocation2 + $0xa0] sm:$0xff]  ;;  %v239_v46 = vld [vmem:[#allocation2 + $0x98] sm:$0xff]  ;;  %v238_v53 = vld [vmem:[#allocation2 + $0x90] sm:$0xff]  ;;  %s2463_s22 = scalar_lea.vmem %s3798_s17, 512  ;;  %p4451_p12 = scmp.ne.s32.totalorder %s4069_s24, 0 }
  0x62   : > { %289 = vmatprep.subr.mxu0 %v2732_v5  ;;  %v3874_v23 = vand.u32 4294901760, %v2742_v15  ;;  %v3873_v24 = vand.u32 4294901760, %v2745_v16  ;;  %v2765_v26 = vand.u32 4294901760, %v243_v14  ;;  %v2769_v30 = vand.u32 4294901760, %v242_v19  ;;  %v237_v58 = vld [vmem:[#allocation2 + $0x88] sm:$0xff]  ;;  %v236_v2 = vld [vmem:[#allocation2 + $0x80] sm:$0xff]  ;;  %p2464_p4 = scmp.ne.s32.totalorder %s3798_s17, %s2463_s22 }
  0x63   : > { %v3872_v25 = vand.u32 4294901760, %v2750_v18  ;;  %v3870_v28 = vand.u32 4294901760, %v2756_v21  ;;  %v3869_v29 = vand.u32 4294901760, %v2759_v22  ;;  %v2772_v31 = vsub.f32 %v246_v8, %v2738_v11  ;;  %s2545_s27 = smov [#allocation8]  }
  0x64   : > { %v448_v32 = vsub.f32 %v2742_v15, %v3874_v23  ;;  %v454_v33 = vsub.f32 %v2745_v16, %v3873_v24  ;;  %v2784_v35 = vsub.f32 %v245_v12, %v2747_v17  ;;  %v2794_v39 = vand.u32 4294901760, %v241_v27  ;;  %v235_v12 = vld [vmem:[#allocation2 + $0x78] sm:$0xff]  ;;  %p2465_p8 = pnand %p2464_p4, %p4451_p12  ;;  %s2467_s6 = sshll.u32 %s2545_s27, 4  ;;  %s2468_s6 = int_to_ptr.vmem [resolvable:$false] %s2467_s6 }
  0x65   : > { %v460_v34 = vsub.f32 %v2750_v18, %v3872_v25  ;;  %291 = vmatpush1.xpose.msra.mxu0 %v2734_v9  ;;  %v466_v36 = vsub.f32 %v2756_v21, %v3870_v28  ;;  %v472_v37 = vsub.f32 %v2759_v22, %v3869_v29  ;;  %v3867_v38 = vand.u32 4294901760, %v2772_v31  ;;  %s2469_s11 = scalar_lea.vmem %s2468_s6, 1024  ;;  %p2470_p10 = scmp.lt.s32.totalorder %s3798_s17, %s2468_s6 }
  0x66   : > { %293 = vmatprep.subr.mxu0 %v2736_v10  ;;  %v449_v41 = vand.u32 4294901760, %v448_v32  ;;  %v455_v42 = vand.u32 4294901760, %v454_v33  ;;  %v3866_v44 = vand.u32 4294901760, %v2784_v35  ;;  %v2799_v45 = vsub.f32 %v244_v13, %v2753_v20  ;;  %p2466_p9 = pneg %p2465_p8  ;;  %p2471_p1 = scmp.lt.s32.totalorder %s2469_s11, %s2463_s22 }
  0x67   : > { %v461_v43 = vand.u32 4294901760, %v460_v34  ;;  %v467_v47 = vand.u32 4294901760, %v466_v36  ;;  %v2801_v48 = vand.u32 4294901760, %v240_v40  ;;  %v2804_v49 = vsub.f32 %v243_v14, %v2765_v26  ;;  %v234_v34 = vld [vmem:[#allocation2 + $0x70] sm:$0xff] }
  0x68   : > { %450 = vmatprep.subr.mxu1 %v449_v41  ;;  %v473_v50 = vand.u32 4294901760, %v472_v37  ;;  %v478_v51 = vsub.f32 %v2772_v31, %v3867_v38  ;;  %v3864_v52 = vand.u32 4294901760, %v2799_v45  ;;  %v2812_v54 = vsub.f32 %v242_v19, %v2769_v30  ;;  %p2472_p5 = por %p2471_p1, %p2470_p10 }
  0x69   : > { %295 = vmatpush1.xpose.msra.mxu0 %v2738_v11  ;;  %456 = vmatpush1.xpose.msra.mxu1 %v455_v42  ;;  %v484_v55 = vsub.f32 %v2784_v35, %v3866_v44  ;;  %v2818_v56 = vand.u32 4294901760, %v239_v46  ;;  %v3863_v57 = vand.u32 4294901760, %v2804_v49  ;;  %v2822_v59 = vsub.f32 %v241_v27, %v2794_v39  ;;  %v233_v42 = vld [vmem:[#allocation2 + $0x68] sm:$0xff]  ;;  %v228_v44 = vld [vmem:[#allocation2 + $0x40] sm:$0xff] }
  0x6a   : > { %297 = vmatprep.subr.mxu0 %v2747_v17  ;;  %462 = vmatprep.subr.mxu1 %v461_v43  ;;  %v2824_v60 = vand.u32 4294901760, %v238_v53  ;;  %v2827_v61 = vsub.f32 %v240_v40, %v2801_v48  ;;  %v479_v62 = vand.u32 4294901760, %v478_v51  ;;  %v490_v63 = vsub.f32 %v2799_v45, %v3864_v52  ;;  %p2473_p0 = pnand %p2472_p5, %p2466_p9 }
  0x6b   : > { %v3861_v0 = vand.u32 4294901760, %v2812_v54  ;;  %v2834_v1 = vand.u32 4294901760, %v237_v58  ;;  %v485_v6 = vand.u32 4294901760, %v484_v55  ;;  %v496_v7 = vsub.f32 %v2804_v49, %v3863_v57  ;;  %v232_v55 = vld [vmem:[#allocation2 + $0x60] sm:$0xff] }
  0x6c   : > { %v3860_v8 = vand.u32 4294901760, %v2822_v59  ;;  %v2842_v13 = vsub.f32 %v239_v46, %v2818_v56  ;;  %v2844_v14 = vand.u32 4294901760, %v236_v2  ;;  %v3858_v19 = vand.u32 4294901760, %v2827_v61 }
  0x6d   : > { %299 = vmatpush1.xpose.msra.mxu0 %v2753_v20  ;;  %468 = vmatpush1.xpose.msra.mxu1 %v467_v47  ;;  %4083 = vst [vmem:[#allocation13_spill] sm:$0xff] %v2834_v1  ;;  %v491_v27 = vand.u32 4294901760, %v490_v63  ;;  %v502_v32 = vsub.f32 %v2812_v54, %v3861_v0  ;;  %v2851_v33 = vand.u32 4294901760, %v235_v12  ;;  %v2854_v36 = vsub.f32 %v238_v53, %v2824_v60  ;;  %v229_v0 = vld [vmem:[#allocation2 + $0x48] sm:$0xff] }
  0x6e   : > { %301 = vmatprep.subr.mxu0 %v2765_v26  ;;  %474 = vmatprep.subr.mxu1 %v473_v50  ;;  %4084 = vst [vmem:[#allocation14_spill] sm:$0xff] %v2844_v14  ;;  %v497_v37 = vand.u32 4294901760, %v496_v7  ;;  %v508_v40 = vsub.f32 %v2822_v59, %v3860_v8  ;;  %v3859_v41 = vand.u32 4294901760, %v2842_v13  ;;  %v2862_v43 = vsub.f32 %v237_v58, %v2834_v1  ;;  %v231_v7 = vld [vmem:[#allocation2 + $0x58] sm:$0xff] }
  0x6f   : > { %4085 = vst [vmem:[#allocation15_spill] sm:$0xff] %v2851_v33  ;;  %v514_v46 = vsub.f32 %v2827_v61, %v3858_v19  ;;  %v2867_v47 = vand.u32 4294901760, %v234_v34  ;;  %v503_v50 = vand.u32 4294901760, %v502_v32  ;;  %v3862_v51 = vand.u32 4294901760, %v2854_v36 }
  0x70   : > { %v2871_v53 = vand.u32 4294901760, %v233_v42  ;;  %v509_v58 = vand.u32 4294901760, %v508_v40  ;;  %v520_v63 = vsub.f32 %v2842_v13, %v3859_v41  ;;  %v2884_v19 = vand.u32 4294901760, %v232_v55  ;;  %v230_v41 = vld [vmem:[#allocation2 + $0x50] sm:$0xff] }
  0x71   : > { %303 = vmatpush1.xpose.msra.mxu0 %v2769_v30  ;;  %480 = vmatpush1.xpose.msra.mxu1 %v479_v62  ;;  %4086 = vst [vmem:[#allocation16_spill] sm:$0xff] %v2867_v47  ;;  %v2874_v62 = vsub.f32 %v236_v2, %v2844_v14  ;;  %v515_v32 = vand.u32 4294901760, %v514_v46  ;;  %v526_v2 = vsub.f32 %v2854_v36, %v3862_v51  ;;  %v2891_v40 = vand.u32 4294901760, %v231_v7 }
  0x72   : > { %305 = vmatprep.subr.mxu0 %v2794_v39  ;;  %486 = vmatprep.subr.mxu1 %v485_v6  ;;  %4087 = vst [vmem:[#allocation17_spill] sm:$0xff] %v2871_v53  ;;  %v3865_v6 = vand.u32 4294901760, %v2862_v43  ;;  %4088 = vst [vmem:[#allocation18_spill] sm:$0xff] %v2884_v19  ;;  %v2894_v8 = vsub.f32 %v234_v34, %v2867_v47  ;;  %v2902_v51 = vsub.f32 %v233_v42, %v2871_v53 }
  0x73   : > { %4089 = vst [vmem:[#allocation19_spill] sm:$0xff] %v2891_v40  ;;  %v2904_v57 = vand.u32 4294901760, %v230_v41  ;;  %v2907_v52 = vsub.f32 %v232_v55, %v2884_v19  ;;  %v527_v34 = vand.u32 4294901760, %v526_v2  ;;  %v227_v2 = vld [vmem:[#allocation2 + $0x38] sm:$0xff]  ;;  %v2922_v38 = vsub.f32 %v231_v7, %v2891_v40 }
  0x74   : > { %v532_v46 = vsub.f32 %v2862_v43, %v3865_v6  ;;  %v2914_v6 = vand.u32 4294901760, %v229_v0 }
  0x75   : > { %307 = vmatpush1.xpose.msra.mxu0 %v2801_v48  ;;  %492 = vmatpush1.xpose.msra.mxu1 %v491_v27  ;;  %v2882_v27 = vsub.f32 %v235_v12, %v2851_v33  ;;  %v521_v12 = vand.u32 4294901760, %v520_v63  ;;  %4090 = vst [vmem:[#allocation20_spill] sm:$0xff] %v2904_v57  ;;  %4091 = vst [vmem:[#allocation21_spill] sm:$0xff] %v2907_v52  ;;  %v3875_v63 = vand.u32 4294901760, %v2894_v8  ;;  %v3879_v29 = vand.u32 4294901760, %v2907_v52 }
  0x76   : > { %309 = vmatprep.subr.mxu0 %v2818_v56  ;;  %498 = vmatprep.subr.mxu1 %v497_v37  ;;  %v3868_v37 = vand.u32 4294901760, %v2874_v62  ;;  %4092 = vst [vmem:[#allocation22_spill] sm:$0xff] %v2914_v6  ;;  %v533_v42 = vand.u32 4294901760, %v532_v46  ;;  %4093 = vst [vmem:[#allocation23_spill] sm:$0xff] %v2922_v38  ;;  %v2931_v46 = vand.u32 4294901760, %v227_v2  ;;  %v2934_v25 = vsub.f32 %v230_v41, %v2904_v57 }
  0x77   : > { %v2942_v23 = vsub.f32 %v229_v0, %v2914_v6 }
  0x78   : > { %4095 = vst [vmem:[#allocation25_spill] sm:$0xff] %v2931_v46  ;;  %4096 = vst [vmem:[#allocation26_spill] sm:$0xff] %v2934_v25 }
  0x79   : > { %311 = vmatpush1.xpose.msra.mxu0 %v2824_v60  ;;  %504 = vmatpush1.xpose.msra.mxu1 %v503_v50  ;;  %v3871_v50 = vand.u32 4294901760, %v2882_v27  ;;  %4097 = vst [vmem:[#allocation27_spill] sm:$0xff] %v2942_v23 }
  0x7a   : > { %313 = vmatprep.subr.mxu0 %v2834_v1  ;;  %510 = vmatprep.subr.mxu1 %v509_v58  ;;  %v538_v58 = vsub.f32 %v2874_v62, %v3868_v37  ;;  %v2924_v37 = vand.u32 4294901760, %v228_v44 }
  0x7b   : > { %v544_v55 = vsub.f32 %v2882_v27, %v3871_v50  ;;  %v226_v50 = vld [vmem:[#allocation2 + $0x30] sm:$0xff] }
  0x7c   : > { %4094 = vst [vmem:[#allocation24_spill] sm:$0xff] %v2924_v37  ;;  %v539_v28 = vand.u32 4294901760, %v538_v58  ;;  %v225_v58 = vld [vmem:[#allocation2 + $0x28] sm:$0xff]  ;;  %v2947_v41 = vand.u32 4294901760, %v226_v50 }
  0x7d   : > { %315 = vmatpush1.xpose.msra.mxu0 %v2844_v14  ;;  %516 = vmatpush1.xpose.msra.mxu1 %v515_v32  ;;  %v3878_v32 = vand.u32 4294901760, %v2902_v51  ;;  %v545_v7 = vand.u32 4294901760, %v544_v55 }
  0x7e   : > { %317 = vmatprep.subr.mxu0 %v2851_v33  ;;  %522 = vmatprep.subr.mxu1 %v521_v12  ;;  %v550_v12 = vsub.f32 %v2894_v8, %v3875_v63  ;;  %v562_v63 = vsub.f32 %v2907_v52, %v3879_v29  ;;  %4098 = vst [vmem:[#allocation28_spill] sm:$0xff] %v2947_v41  ;;  %v4101_v29 = vand.u32 4294901760, %v2922_v38 }
  0x7f   : > { %v556_v24 = vsub.f32 %v2902_v51, %v3878_v32  ;;  %v224_v32 = vld [vmem:[#allocation2 + $0x20] sm:$0xff] }
  0x80   : > { %v563_v55 = vand.u32 4294901760, %v562_v63  ;;  %v2964_v33 = vand.u32 4294901760, %v224_v32 }
  0x81   : > { %319 = vmatpush1.xpose.msra.mxu0 %v2867_v47  ;;  %528 = vmatpush1.xpose.msra.mxu1 %v527_v34  ;;  %v2954_v34 = vsub.f32 %v228_v44, %v2924_v37  ;;  %v557_v0 = vand.u32 4294901760, %v556_v24  ;;  %v568_v47 = vsub.f32 %v2922_v38, %v4101_v29  ;;  %v4104_v44 = vand.u32 4294901760, %v2934_v25  ;;  %v222_v29 = vld [vmem:[#allocation2 + $0x10] sm:$0xff]  ;;  %v221_v38 = vld [vmem:[#allocation2 + $0x8] sm:$0xff] }
  0x82   : > { %321 = vmatprep.subr.mxu0 %v2871_v53  ;;  %534 = vmatprep.subr.mxu1 %v533_v42  ;;  %v551_v42 = vand.u32 4294901760, %v550_v12  ;;  %v2951_v53 = vand.u32 4294901760, %v225_v58  ;;  %v2962_v12 = vsub.f32 %v227_v2, %v2931_v46  ;;  %4103 = vst [vmem:[#allocation32_spill] sm:$0xff] %v2964_v33  ;;  %v4107_v2 = vand.u32 4294901760, %v2942_v23 }
  0x83   : > { %4100 = vst [vmem:[#allocation30_spill] sm:$0xff] %v2954_v34  ;;  %v574_v24 = vsub.f32 %v2934_v25, %v4104_v44  ;;  %v569_v63 = vand.u32 4294901760, %v568_v47  ;;  %v2987_v25 = vsub.f32 %v224_v32, %v2964_v33  ;;  %v4111_v47 = vand.u32 4294901760, %v2954_v34 }
  0x84   : > { %4099 = vst [vmem:[#allocation29_spill] sm:$0xff] %v2951_v53  ;;  %4102 = vst [vmem:[#allocation31_spill] sm:$0xff] %v2962_v12  ;;  %v2982_v44 = vsub.f32 %v225_v58, %v2951_v53  ;;  %v4113_v32 = vand.u32 4294901760, %v2962_v12 }
  0x85   : > { %323 = vmatpush1.xpose.msra.mxu0 %v2884_v19  ;;  %540 = vmatpush1.xpose.msra.mxu1 %v539_v28  ;;  %v223_v28 = vld [vmem:[#allocation2 + $0x18] sm:$0xff]  ;;  %v2974_v19 = vsub.f32 %v226_v50, %v2947_v41  ;;  %4110 = vst [vmem:[#allocation37_spill] sm:$0xff] %v2987_v25  ;;  %v575_v50 = vand.u32 4294901760, %v574_v24 }
  0x86   : > { %325 = vmatprep.subr.mxu0 %v2891_v40  ;;  %546 = vmatprep.subr.mxu1 %v545_v7  ;;  %v2971_v40 = vand.u32 4294901760, %v223_v28  ;;  %4108 = vst [vmem:[#allocation35_spill] sm:$0xff] %v2982_v44  ;;  %v2984_v7 = vand.u32 4294901760, %v222_v29  ;;  %v283_v24 = vld [vmem:[#allocation2 + $0x1f8] sm:$0xff] }
  0x87   : > { %4106 = vst [vmem:[#allocation34_spill] sm:$0xff] %v2974_v19 }
  0x88   : > { %4105 = vst [vmem:[#allocation33_spill] sm:$0xff] %v2971_v40  ;;  %4109 = vst [vmem:[#allocation36_spill] sm:$0xff] %v2984_v7 }
  0x89   : > { %327 = vmatpush1.xpose.msra.mxu0 %v2904_v57  ;;  %552 = vmatpush1.xpose.msra.mxu1 %v551_v42  ;;  %v580_v42 = vsub.f32 %v2942_v23, %v4107_v2  ;;  %v2994_v57 = vand.u32 4294901760, %v221_v38  ;;  %v592_v23 = vsub.f32 %v2962_v12, %v4113_v32  ;;  %v282_v32 = vld [vmem:[#allocation2 + $0x1f0] sm:$0xff]  ;;  %v4119_v2 = vand.u32 4294901760, %v2982_v44 }
  0x8a   : > { %329 = vmatprep.subr.mxu0 %v2914_v6  ;;  %558 = vmatprep.subr.mxu1 %v557_v0  ;;  %v586_v0 = vsub.f32 %v2954_v34, %v4111_v47  ;;  %v220_v6 = vld [vmem:[#allocation2] sm:$0xff]  ;;  %v3011_v34 = vand.u32 4294901760, %v283_v24 }
  0x8b   : > { %4112 = vst [vmem:[#allocation38_spill] sm:$0xff] %v2994_v57  ;;  %v581_v58 = vand.u32 4294901760, %v580_v42  ;;  %v3004_v47 = vand.u32 4294901760, %v220_v6  ;;  %v3022_v12 = vsub.f32 %v221_v38, %v2994_v57 }
  0x8c   : > { %4117 = vst [vmem:[#allocation41_spill] sm:$0xff] %v3011_v34 }
  0x8d   : > { %331 = vmatpush1.xpose.msra.mxu0 %v2924_v37  ;;  %564 = vmatpush1.xpose.msra.mxu1 %v563_v55  ;;  %v3002_v37 = vsub.f32 %v223_v28, %v2971_v40  ;;  %4115 = vst [vmem:[#allocation40_spill] sm:$0xff] %v3004_v47  ;;  %v3014_v55 = vsub.f32 %v222_v29, %v2984_v7  ;;  %v593_v28 = vand.u32 4294901760, %v592_v23  ;;  %4120 = vst [vmem:[#allocation43_spill] sm:$0xff] %v3022_v12 }
  0x8e   : > { %333 = vmatprep.subr.mxu0 %v2931_v46  ;;  %570 = vmatprep.subr.mxu1 %v569_v63  ;;  %v587_v46 = vand.u32 4294901760, %v586_v0  ;;  %v4116_v63 = vand.u32 4294901760, %v2974_v19  ;;  %v281_v0 = vld [vmem:[#allocation2 + $0x1e8] sm:$0xff]  ;;  %v3027_v29 = vand.u32 4294901760, %v282_v32 }
  0x8f   : > { %4114 = vst [vmem:[#allocation39_spill] sm:$0xff] %v3002_v37  ;;  %4118 = vst [vmem:[#allocation42_spill] sm:$0xff] %v3014_v55 }
  0x90   : > { %v598_v42 = vsub.f32 %v2974_v19, %v4116_v63  ;;  %v4121_v63 = vand.u32 4294901760, %v2987_v25  ;;  %4122 = vst [vmem:[#allocation44_spill] sm:$0xff] %v3027_v29 }
  0x91   : > { %335 = vmatpush1.xpose.msra.mxu0 %v2947_v41  ;;  %576 = vmatpush1.xpose.msra.mxu1 %v575_v50  ;;  %v604_v41 = vsub.f32 %v2982_v44, %v4119_v2  ;;  %v280_v2 = vld [vmem:[#allocation2 + $0x1e0] sm:$0xff]  ;;  %v3034_v50 = vsub.f32 %v220_v6, %v3004_v47  ;;  %v4128_v6 = vand.u32 4294901760, %v3014_v55 }
  0x92   : > { %337 = vmatprep.subr.mxu0 %v2951_v53  ;;  %582 = vmatprep.subr.mxu1 %v581_v58  ;;  %v610_v19 = vsub.f32 %v2987_v25, %v4121_v63  ;;  %v599_v23 = vand.u32 4294901760, %v598_v42  ;;  %v3031_v53 = vand.u32 4294901760, %v281_v0  ;;  %v4125_v63 = vand.u32 4294901760, %v3002_v37 }
  0x93   : > { %4124 = vst [vmem:[#allocation46_spill] sm:$0xff] %v3034_v50  ;;  %v605_v38 = vand.u32 4294901760, %v604_v41  ;;  %v3042_v42 = vsub.f32 %v283_v24, %v3011_v34  ;;  %v3044_v44 = vand.u32 4294901760, %v280_v2  ;;  %v622_v41 = vsub.f32 %v3014_v55, %v4128_v6 }
  0x94   : > { %4123 = vst [vmem:[#allocation45_spill] sm:$0xff] %v3031_v53  ;;  %v616_v25 = vsub.f32 %v3002_v37, %v4125_v63  ;;  %v611_v58 = vand.u32 4294901760, %v610_v19  ;;  %v278_v63 = vld [vmem:[#allocation2 + $0x1d0] sm:$0xff]  ;;  %v4131_v24 = vand.u32 4294901760, %v3022_v12  ;;  %v277_v37 = vld [vmem:[#allocation2 + $0x1c8] sm:$0xff]  ;;  %v3062_v6 = vsub.f32 %v281_v0, %v3031_v53 }
  0x95   : > { %339 = vmatpush1.xpose.msra.mxu0 %v2964_v33  ;;  %588 = vmatpush1.xpose.msra.mxu1 %v587_v46  ;;  %v279_v46 = vld [vmem:[#allocation2 + $0x1d8] sm:$0xff]  ;;  %4126 = vst [vmem:[#allocation47_spill] sm:$0xff] %v3042_v42  ;;  %4127 = vst [vmem:[#allocation48_spill] sm:$0xff] %v3044_v44  ;;  %v3054_v33 = vsub.f32 %v282_v32, %v3027_v29  ;;  %v3067_v55 = vsub.f32 %v280_v2, %v3044_v44  ;;  %v623_v32 = vand.u32 4294901760, %v622_v41 }
  0x96   : > { %341 = vmatprep.subr.mxu0 %v2971_v40  ;;  %594 = vmatprep.subr.mxu1 %v593_v28  ;;  %v3051_v40 = vand.u32 4294901760, %v279_v46  ;;  %v617_v19 = vand.u32 4294901760, %v616_v25  ;;  %4132 = vst [vmem:[#allocation51_spill] sm:$0xff] %v3062_v6  ;;  %v3064_v28 = vand.u32 4294901760, %v278_v63  ;;  %v4135_v25 = vand.u32 4294901760, %v3034_v50  ;;  %v275_v41 = vld [vmem:[#allocation2 + $0x1b8] sm:$0xff] }
  0x97   : > { %4130 = vst [vmem:[#allocation50_spill] sm:$0xff] %v3054_v33  ;;  %4134 = vst [vmem:[#allocation53_spill] sm:$0xff] %v3067_v55 }
  0x98   : > { %4129 = vst [vmem:[#allocation49_spill] sm:$0xff] %v3051_v40  ;;  %4133 = vst [vmem:[#allocation52_spill] sm:$0xff] %v3064_v28 }
  0x99   : > { %343 = vmatpush1.xpose.msra.mxu0 %v2984_v7  ;;  %600 = vmatpush1.xpose.msra.mxu1 %v599_v23  ;;  %v628_v23 = vsub.f32 %v3022_v12, %v4131_v24  ;;  %v3074_v7 = vand.u32 4294901760, %v277_v37  ;;  %v3082_v12 = vsub.f32 %v279_v46, %v3051_v40  ;;  %v3086_v24 = vsub.f32 %v278_v63, %v3064_v28 }
  0x9a   : > { %345 = vmatprep.subr.mxu0 %v2994_v57  ;;  %606 = vmatprep.subr.mxu1 %v605_v38  ;;  %v634_v38 = vsub.f32 %v3034_v50, %v4135_v25  ;;  %v4137_v57 = vand.u32 4294901760, %v3042_v42  ;;  %v4143_v63 = vand.u32 4294901760, %v3062_v6 }
  0x9b   : > { %4136 = vst [vmem:[#allocation54_spill] sm:$0xff] %v3074_v7  ;;  %v629_v0 = vand.u32 4294901760, %v628_v23  ;;  %4138 = vst [vmem:[#allocation55_spill] sm:$0xff] %v3082_v12  ;;  %v4140_v23 = vand.u32 4294901760, %v3054_v33 }
  0x9c   : > { %v640_v2 = vsub.f32 %v3042_v42, %v4137_v57  ;;  %4139 = vst [vmem:[#allocation56_spill] sm:$0xff] %v3086_v24  ;;  %v652_v25 = vsub.f32 %v3062_v6, %v4143_v63  ;;  %v3102_v42 = vsub.f32 %v277_v37, %v3074_v7 }
  0x9d   : > { %347 = vmatpush1.xpose.msra.mxu0 %v3004_v47  ;;  %612 = vmatpush1.xpose.msra.mxu1 %v611_v58  ;;  %v276_v58 = vld [vmem:[#allocation2 + $0x1c0] sm:$0xff]  ;;  %v646_v57 = vsub.f32 %v3054_v33, %v4140_v23  ;;  %v4145_v23 = vand.u32 4294901760, %v3067_v55 }
  0x9e   : > { %349 = vmatprep.subr.mxu0 %v3011_v34  ;;  %618 = vmatprep.subr.mxu1 %v617_v19  ;;  %v635_v19 = vand.u32 4294901760, %v634_v38  ;;  %v3092_v47 = vand.u32 4294901760, %v276_v58  ;;  %v3094_v34 = vand.u32 4294901760, %v275_v41  ;;  %v641_v46 = vand.u32 4294901760, %v640_v2  ;;  %v273_v38 = vld [vmem:[#allocation2 + $0x1a8] sm:$0xff]  ;;  %4144 = vst [vmem:[#allocation59_spill] sm:$0xff] %v3102_v42 }
  0x9f   : > { %v658_v33 = vsub.f32 %v3067_v55, %v4145_v23  ;;  %v3112_v63 = vand.u32 4294901760, %v273_v38  ;;  %v653_v37 = vand.u32 4294901760, %v652_v25  ;;  %v4149_v23 = vand.u32 4294901760, %v3082_v12 }
  0xa0   : > { %4141 = vst [vmem:[#allocation57_spill] sm:$0xff] %v3092_v47  ;;  %4142 = vst [vmem:[#allocation58_spill] sm:$0xff] %v3094_v34  ;;  %v3115_v6 = vsub.f32 %v276_v58, %v3092_v47  ;;  %v4152_v58 = vand.u32 4294901760, %v3086_v24 }
  0xa1   : > { %351 = vmatpush2.xpose.msra.mxu0 %v3027_v29  ;;  %624 = vmatpush1.xpose.msra.mxu1 %v623_v32  ;;  %v274_v32 = vld [vmem:[#allocation2 + $0x1b0] sm:$0xff]  ;;  %4147 = vst [vmem:[#allocation61_spill] sm:$0xff] %v3112_v63  ;;  %v272_v29 = vld [vmem:[#allocation2 + $0x1a0] sm:$0xff]  ;;  %v664_v50 = vsub.f32 %v3082_v12, %v4149_v23  ;;  %v659_v14 = vand.u32 4294901760, %v658_v33 }
  0xa2   : > { %353 = vmatprep.subr.mxu0 %v3031_v53  ;;  %630 = vmatprep.subr.mxu1 %v629_v0  ;;  %v217_v53 = vld [vmem:[%s2722_s9 + $0x8] sm:$0xff]  ;;  %v647_v0 = vand.u32 4294901760, %v646_v57  ;;  %v3110_v2 = vand.u32 4294901760, %v274_v32  ;;  %4148 = vst [vmem:[#allocation62_spill] sm:$0xff] %v3115_v6  ;;  %v3123_v57 = vsub.f32 %v275_v41, %v3094_v34  ;;  %v670_v52 = vsub.f32 %v3086_v24, %v4152_v58  ;;  %v270_v23 = vld [vmem:[#allocation2 + $0x190] sm:$0xff] }
  0xa3   : > { %v3125_v55 = vand.u32 4294901760, %v217_v53  ;;  %v665_v58 = vand.u32 4294901760, %v664_v50  ;;  %v4156_v24 = vand.u32 4294901760, %v3102_v42  ;;  %v4160_v50 = vand.u32 4294901760, %v3115_v6 }
  0xa4   : > { %4146 = vst [vmem:[#allocation60_spill] sm:$0xff] %v3110_v2  ;;  %4150 = vst [vmem:[#allocation63_spill] sm:$0xff] %v3123_v57  ;;  %v3137_v41 = vsub.f32 %v274_v32, %v3110_v2  ;;  %v671_v12 = vand.u32 4294901760, %v670_v52 }
  0xa5   : > { %355 = vmatpush2.xpose.msra.mxu0 %v3044_v44  ;;  %636 = vmatpush1.xpose.msra.mxu1 %v635_v19  ;;  %v271_v19 = vld [vmem:[#allocation2 + $0x198] sm:$0xff]  ;;  %4151 = vst [vmem:[#allocation64_spill] sm:$0xff] %v3125_v55  ;;  %v269_v44 = vld [vmem:[#allocation2 + $0x188] sm:$0xff]  ;;  %v3140_v33 = vsub.f32 %v217_v53, %v3125_v55  ;;  %v3152_v53 = vand.u32 4294901760, %v270_v23 }
  0xa6   : > { %357 = vmatprep.subr.mxu0 %v3051_v40  ;;  %642 = vmatprep.subr.mxu1 %v641_v46  ;;  %v3130_v40 = vand.u32 4294901760, %v272_v29  ;;  %v3134_v46 = vand.u32 4294901760, %v271_v19  ;;  %4155 = vst [vmem:[#allocation67_spill] sm:$0xff] %v3137_v41  ;;  %v3154_v1 = vand.u32 4294901760, %v269_v44 }
  0xa7   : > { %v3974_v32 = vand.u32 4294901760, %v3140_v33  ;;  %830 = vmatprep.mubr.f32.mxu1 %v3125_v55  ;;  %4158 = vst [vmem:[#allocation69_spill] sm:$0xff] %v3152_v53 }
  0xa8   : > { %4153 = vst [vmem:[#allocation65_spill] sm:$0xff] %v3130_v40  ;;  %4154 = vst [vmem:[#allocation66_spill] sm:$0xff] %v3134_v46  ;;  %v3162_v25 = vsub.f32 %v272_v29, %v3130_v40 }
  0xa9   : > { %359 = vmatpush2.xpose.msra.mxu0 %v3064_v28  ;;  %648 = vmatpush2.xpose.msra.mxu1 %v647_v0  ;;  %v676_v0 = vsub.f32 %v3102_v42, %v4156_v24  ;;  %v3148_v28 = vsub.f32 %v273_v38, %v3112_v63  ;;  %4159 = vst [vmem:[#allocation70_spill] sm:$0xff] %v3154_v1  ;;  %v268_v38 = vld [vmem:[#allocation2 + $0x180] sm:$0xff] }
  0xaa   : > { %361 = vmatprep.subr.mxu0 %v3074_v7  ;;  %654 = vmatprep.subr.mxu1 %v653_v37  ;;  %v682_v24 = vsub.f32 %v3115_v6, %v4160_v50  ;;  %4161 = vst [vmem:[#allocation71_spill] sm:$0xff] %v3162_v25  ;;  %v415_v52 = vsub.f32 %v3140_v33, %v3974_v32  ;;  %v267_v7 = vld [vmem:[#allocation2 + $0x178] sm:$0xff]  ;;  %v3175_v6 = vand.u32 4294901760, %v268_v38 }
  0xab   : > { %4157 = vst [vmem:[#allocation68_spill] sm:$0xff] %v3148_v28  ;;  %v677_v55 = vand.u32 4294901760, %v676_v0  ;;  %v3173_v37 = vsub.f32 %v271_v19, %v3134_v46  ;;  %v3178_v42 = vsub.f32 %v270_v23, %v3152_v53  ;;  %v4166_v0 = vand.u32 4294901760, %v3137_v41  ;;  %v266_v19 = vld [vmem:[#allocation2 + $0x170] sm:$0xff] }
  0xac   : > { %v416_v29 = vand.u32 4294901760, %v415_v52  ;;  %4164 = vst [vmem:[#allocation73_spill] sm:$0xff] %v3175_v6  ;;  %v3185_v50 = vand.u32 4294901760, %v267_v7  ;;  %v4168_v23 = vand.u32 4294901760, %v3148_v28 }
  0xad   : > { %363 = vmatpush2.xpose.msra.mxu0 %v3092_v47  ;;  %660 = vmatpush2.xpose.msra.mxu1 %v659_v14  ;;  %v4162_v14 = vand.u32 4294901760, %v3123_v57  ;;  %4163 = vst [vmem:[#allocation72_spill] sm:$0xff] %v3173_v37  ;;  %4165 = vst [vmem:[#allocation74_spill] sm:$0xff] %v3178_v42 }
  0xae   : > { %365 = vmatprep.subr.mxu0 %v3094_v34  ;;  %666 = vmatprep.subr.mxu1 %v665_v58  ;;  %v683_v58 = vand.u32 4294901760, %v682_v24  ;;  %4167 = vst [vmem:[#allocation75_spill] sm:$0xff] %v3185_v50  ;;  %v700_v34 = vsub.f32 %v3148_v28, %v4168_v23  ;;  %v265_v24 = vld [vmem:[#allocation2 + $0x168] sm:$0xff]  ;;  %v3205_v28 = vsub.f32 %v268_v38, %v3175_v6 }
  0xaf   : > { %v688_v47 = vsub.f32 %v3123_v57, %v4162_v14  ;;  %v694_v14 = vsub.f32 %v3137_v41, %v4166_v0  ;;  %417 = vmatprep.mubr.f32.mxu0 %v416_v29  ;;  %v3195_v0 = vand.u32 4294901760, %v266_v19  ;;  %v3202_v23 = vand.u32 4294901760, %v265_v24 }
  0xb0   : > { %4173 = vst [vmem:[#allocation79_spill] sm:$0xff] %v3205_v28  ;;  %v4174_v29 = vand.u32 4294901760, %v3173_v37 }
  0xb1   : > { %367 = vmatpush2.xpose.msra.mxu0 %v3110_v2  ;;  %672 = vmatpush2.xpose.msra.mxu1 %v671_v12  ;;  %v689_v52 = vand.u32 4294901760, %v688_v47  ;;  %v3193_v2 = vsub.f32 %v269_v44, %v3154_v1  ;;  %4170 = vst [vmem:[#allocation77_spill] sm:$0xff] %v3195_v0  ;;  %v4171_v47 = vand.u32 4294901760, %v3162_v25  ;;  %4172 = vst [vmem:[#allocation78_spill] sm:$0xff] %v3202_v23  ;;  %v264_v12 = vld [vmem:[#allocation2 + $0x160] sm:$0xff]  ;;  %v701_v44 = vand.u32 4294901760, %v700_v34 }
  0xb2   : > { %369 = vmatprep.subr.mxu0 %v3112_v63  ;;  %678 = vmatprep.subr.mxu1 %v677_v55  ;;  %v695_v55 = vand.u32 4294901760, %v694_v14  ;;  %v712_v32 = vsub.f32 %v3173_v37, %v4174_v29  ;;  %v263_v14 = vld [vmem:[#allocation2 + $0x158] sm:$0xff]  ;;  %v3218_v38 = vand.u32 4294901760, %v264_v12  ;;  %v262_v29 = vld [vmem:[#allocation2 + $0x150] sm:$0xff] }
  0xb3   : > { %4169 = vst [vmem:[#allocation76_spill] sm:$0xff] %v3193_v2  ;;  %v706_v63 = vsub.f32 %v3162_v25, %v4171_v47  ;;  %v4176_v47 = vand.u32 4294901760, %v3178_v42  ;;  %v3235_v37 = vand.u32 4294901760, %v262_v29 }
  0xb4   : > { %4177 = vst [vmem:[#allocation81_spill] sm:$0xff] %v3218_v38 }
  0xb5   : > { %371 = vmatpush2.xpose.msra.mxu0 %v3130_v40  ;;  %684 = vmatpush2.xpose.msra.mxu1 %v683_v58  ;;  %v3213_v40 = vsub.f32 %v267_v7, %v3185_v50  ;;  %v718_v25 = vsub.f32 %v3178_v42, %v4176_v47  ;;  %v707_v34 = vand.u32 4294901760, %v706_v63  ;;  %v3225_v58 = vsub.f32 %v266_v19, %v3195_v0 }
  0xb6   : > { %373 = vmatprep.subr.mxu0 %v3134_v46  ;;  %690 = vmatprep.subr.mxu1 %v689_v52  ;;  %v3222_v46 = vand.u32 4294901760, %v263_v14  ;;  %v713_v7 = vand.u32 4294901760, %v712_v32  ;;  %v4180_v47 = vand.u32 4294901760, %v3193_v2  ;;  %v3233_v63 = vsub.f32 %v265_v24, %v3202_v23  ;;  %4182 = vst [vmem:[#allocation85_spill] sm:$0xff] %v3235_v37  ;;  %v259_v24 = vld [vmem:[#allocation2 + $0x138] sm:$0xff] }
  0xb7   : > { %4175 = vst [vmem:[#allocation80_spill] sm:$0xff] %v3213_v40  ;;  %4179 = vst [vmem:[#allocation83_spill] sm:$0xff] %v3225_v58  ;;  %v719_v52 = vand.u32 4294901760, %v718_v25  ;;  %v4183_v19 = vand.u32 4294901760, %v3205_v28 }
  0xb8   : > { %4178 = vst [vmem:[#allocation82_spill] sm:$0xff] %v3222_v46  ;;  %v724_v42 = vsub.f32 %v3193_v2, %v4180_v47  ;;  %4181 = vst [vmem:[#allocation84_spill] sm:$0xff] %v3233_v63  ;;  %v260_v47 = vld [vmem:[#allocation2 + $0x140] sm:$0xff]  ;;  %v3265_v2 = vsub.f32 %v262_v29, %v3235_v37 }
  0xb9   : > { %375 = vmatpush2.xpose.msra.mxu0 %v3152_v53  ;;  %696 = vmatpush2.xpose.msra.mxu1 %v695_v55  ;;  %v261_v55 = vld [vmem:[#allocation2 + $0x148] sm:$0xff]  ;;  %v730_v32 = vsub.f32 %v3205_v28, %v4183_v19  ;;  %v3245_v53 = vsub.f32 %v264_v12, %v3218_v38  ;;  %v3253_v19 = vsub.f32 %v263_v14, %v3222_v46  ;;  %v3257_v28 = vand.u32 4294901760, %v259_v24 }
  0xba   : > { %377 = vmatprep.subr.mxu0 %v3154_v1  ;;  %702 = vmatprep.subr.mxu1 %v701_v44  ;;  %v3242_v1 = vand.u32 4294901760, %v261_v55  ;;  %v725_v25 = vand.u32 4294901760, %v724_v42  ;;  %v3255_v44 = vand.u32 4294901760, %v260_v47  ;;  %4191 = vst [vmem:[#allocation91_spill] sm:$0xff] %v3265_v2 }
  0xbb   : > { %4185 = vst [vmem:[#allocation87_spill] sm:$0xff] %v3245_v53  ;;  %4187 = vst [vmem:[#allocation88_spill] sm:$0xff] %v3253_v19  ;;  %v731_v12 = vand.u32 4294901760, %v730_v32 }
  0xbc   : > { %4184 = vst [vmem:[#allocation86_spill] sm:$0xff] %v3242_v1  ;;  %4188 = vst [vmem:[#allocation89_spill] sm:$0xff] %v3255_v44  ;;  %v3273_v32 = vsub.f32 %v261_v55, %v3242_v1 }
  0xbd   : > { %379 = vmatpush2.xpose.msra.mxu0 %v3175_v6  ;;  %708 = vmatpush2.xpose.msra.mxu1 %v707_v34  ;;  %v4186_v6 = vand.u32 4294901760, %v3213_v40  ;;  %4189 = vst [vmem:[#allocation90_spill] sm:$0xff] %v3257_v28 }
  0xbe   : > { %381 = vmatprep.subr.mxu0 %v3185_v50  ;;  %714 = vmatprep.subr.mxu1 %v713_v7  ;;  %v4190_v7 = vand.u32 4294901760, %v3225_v58  ;;  %4193 = vst [vmem:[#allocation92_spill] sm:$0xff] %v3273_v32  ;;  %v3278_v50 = vsub.f32 %v260_v47, %v3255_v44  ;;  %v4198_v47 = vand.u32 4294901760, %v3253_v19 }
  0xbf   : > { %v736_v34 = vsub.f32 %v3213_v40, %v4186_v6  ;;  %v258_v6 = vld [vmem:[#allocation2 + $0x130] sm:$0xff]  ;;  %v4192_v40 = vand.u32 4294901760, %v3233_v63 }
  0xc0   : > { %v742_v42 = vsub.f32 %v3225_v58, %v4190_v7  ;;  %v257_v7 = vld [vmem:[#allocation2 + $0x128] sm:$0xff]  ;;  %v3275_v58 = vand.u32 4294901760, %v258_v6  ;;  %4195 = vst [vmem:[#allocation94_spill] sm:$0xff] %v3278_v50 }
  0xc1   : > { %383 = vmatpush2.xpose.msra.mxu0 %v3195_v0  ;;  %720 = vmatpush2.xpose.msra.mxu1 %v719_v52  ;;  %v737_v14 = vand.u32 4294901760, %v736_v34  ;;  %v748_v0 = vsub.f32 %v3233_v63, %v4192_v40  ;;  %v3286_v52 = vsub.f32 %v259_v24, %v3257_v28 }
  0xc2   : > { %385 = vmatprep.subr.mxu0 %v3202_v23  ;;  %726 = vmatprep.subr.mxu1 %v725_v25  ;;  %4194 = vst [vmem:[#allocation93_spill] sm:$0xff] %v3275_v58  ;;  %v743_v29 = vand.u32 4294901760, %v742_v42  ;;  %v4196_v25 = vand.u32 4294901760, %v3245_v53  ;;  %v256_v23 = vld [vmem:[#allocation2 + $0x120] sm:$0xff]  ;;  %v3297_v24 = vsub.f32 %v258_v6, %v3275_v58  ;;  %v216_v42 = vld [vmem:[%s2722_s9] sm:$0xff]  ;;  %v4203_v6 = vand.u32 4294901760, %v3273_v32 }
  0xc3   : > { %4197 = vst [vmem:[#allocation95_spill] sm:$0xff] %v3286_v52  ;;  %v749_v55 = vand.u32 4294901760, %v748_v0  ;;  %v4201_v0 = vand.u32 4294901760, %v3265_v2 }
  0xc4   : > { %v754_v34 = vsub.f32 %v3245_v53, %v4196_v25  ;;  %v255_v25 = vld [vmem:[#allocation2 + $0x118] sm:$0xff]  ;;  %4200 = vst [vmem:[#allocation97_spill] sm:$0xff] %v3297_v24  ;;  %v772_v53 = vsub.f32 %v3273_v32, %v4203_v6  ;;  %v252_v32 = vld [vmem:[#allocation2 + $0x100] sm:$0xff] }
  0xc5   : > { %387 = vmatpush2.xpose.msra.mxu0 %v3218_v38  ;;  %732 = vmatpush2.xpose.msra.mxu1 %v731_v12  ;;  %v760_v38 = vsub.f32 %v3253_v19, %v4198_v47  ;;  %v3292_v12 = vand.u32 4294901760, %v257_v7  ;;  %v3303_v47 = vand.u32 4294901760, %v256_v23 }
  0xc6   : > { %389 = vmatprep.subr.mxu0 %v3222_v46  ;;  %738 = vmatprep.subr.mxu1 %v737_v14  ;;  %v755_v14 = vand.u32 4294901760, %v754_v34  ;;  %v766_v46 = vsub.f32 %v3265_v2, %v4201_v0  ;;  %v253_v0 = vld [vmem:[#allocation2 + $0x108] sm:$0xff]  ;;  %v4205_v2 = vand.u32 4294901760, %v3278_v50 }
  0xc7   : > { %4199 = vst [vmem:[#allocation96_spill] sm:$0xff] %v3292_v12  ;;  %4202 = vst [vmem:[#allocation98_spill] sm:$0xff] %v3303_v47  ;;  %v761_v40 = vand.u32 4294901760, %v760_v38  ;;  %v3314_v34 = vsub.f32 %v257_v7, %v3292_v12  ;;  %v3329_v41 = vsub.f32 %v256_v23, %v3303_v47  ;;  %v3332_v63 = vand.u32 4294901760, %v253_v0 }
  0xc8   : > { %v778_v19 = vsub.f32 %v3278_v50, %v4205_v2  ;;  %v767_v38 = vand.u32 4294901760, %v766_v46  ;;  %v773_v2 = vand.u32 4294901760, %v772_v53  ;;  %v3341_v50 = vand.u32 4294901760, %v252_v32 }
  0xc9   : > { %391 = vmatpush2.xpose.msra.mxu0 %v3235_v37  ;;  %744 = vmatpush2.xpose.msra.mxu1 %v743_v29  ;;  %v3311_v37 = vand.u32 4294901760, %v255_v25  ;;  %v254_v29 = vld [vmem:[#allocation2 + $0x110] sm:$0xff]  ;;  %4204 = vst [vmem:[#allocation99_spill] sm:$0xff] %v3314_v34 }
  0xca   : > { %393 = vmatprep.subr.mxu0 %v3242_v1  ;;  %750 = vmatprep.subr.mxu1 %v749_v55  ;;  %v3320_v1 = vand.u32 4294901760, %v216_v42  ;;  %v4207_v55 = vand.u32 4294901760, %v3286_v52  ;;  %v3326_v7 = vand.u32 4294901760, %v254_v29 }
  0xcb   : > { %v3336_v46 = vsub.f32 %v255_v25, %v3311_v37 }
  0xcc   : > { %4206 = vst [vmem:[#allocation100_spill] sm:$0xff] %v3320_v1  ;;  %v784_v6 = vsub.f32 %v3286_v52, %v4207_v55  ;;  %4208 = vst [vmem:[#allocation101_spill] sm:$0xff] %v3326_v7  ;;  %v4210_v55 = vand.u32 4294901760, %v3297_v24  ;;  %v3344_v23 = vsub.f32 %v216_v42, %v3320_v1  ;;  %v3350_v25 = vsub.f32 %v254_v29, %v3326_v7 }
  0xcd   : > { %395 = vmatpush2.xpose.msra.mxu0 %v3255_v44  ;;  %756 = vmatpush2.xpose.msra.mxu1 %v755_v14  ;;  %4209 = vst [vmem:[#allocation102_spill] sm:$0xff] %v3336_v46  ;;  %v779_v44 = vand.u32 4294901760, %v778_v19 }
  0xce   : > { %397 = vmatprep.subr.mxu0 %v3257_v28  ;;  %762 = vmatprep.subr.mxu1 %v761_v40  ;;  %v790_v52 = vsub.f32 %v3297_v24, %v4210_v55  ;;  %4211 = vst [vmem:[#allocation103_spill] sm:$0xff] %v3344_v23  ;;  %v219_v40 = vld [vmem:[%s2722_s9 + $0x18] sm:$0xff]  ;;  %v785_v53 = vand.u32 4294901760, %v784_v6  ;;  %4212 = vst [vmem:[#allocation104_spill] sm:$0xff] %v3350_v25  ;;  %v218_v28 = vld [vmem:[%s2722_s9 + $0x10] sm:$0xff]  ;;  %v4214_v55 = vand.u32 4294901760, %v3314_v34 }
  0xcf   : > { %v3352_v19 = vand.u32 4294901760, %v219_v40  ;;  %v3363_v6 = vand.u32 4294901760, %v218_v28 }
  0xd0   : > { %v796_v42 = vsub.f32 %v3314_v34, %v4214_v55  ;;  %v4216_v55 = vand.u32 4294901760, %v3329_v41 }
  0xd1   : > { %399 = vmatpush2.xpose.msra.mxu0 %v3275_v58  ;;  %768 = vmatpush2.xpose.msra.mxu1 %v767_v38  ;;  %4213 = vst [vmem:[#allocation105_spill] sm:$0xff] %v3352_v19  ;;  %v3361_v38 = vsub.f32 %v253_v0, %v3332_v63  ;;  %4215 = vst [vmem:[#allocation106_spill] sm:$0xff] %v3363_v6  ;;  %v3366_v29 = vsub.f32 %v219_v40, %v3352_v19 }
  0xd2   : > { %401 = vmatprep.subr.mxu0 %v3292_v12  ;;  %774 = vmatprep.subr.mxu1 %v773_v2  ;;  %v3370_v58 = vsub.f32 %v218_v28, %v3363_v6  ;;  %v791_v2 = vand.u32 4294901760, %v790_v52  ;;  %v802_v24 = vsub.f32 %v3329_v41, %v4216_v55  ;;  %v3378_v12 = vsub.f32 %v252_v32, %v3341_v50 }
  0xd3   : > { %v797_v40 = vand.u32 4294901760, %v796_v42  ;;  %v4218_v28 = vand.u32 4294901760, %v3336_v46  ;;  %v4221_v0 = vand.u32 4294901760, %v3366_v29 }
  0xd4   : > { %4217 = vst [vmem:[#allocation107_spill] sm:$0xff] %v3378_v12  ;;  %v803_v32 = vand.u32 4294901760, %v802_v24  ;;  %v4222_v24 = vand.u32 4294901760, %v3370_v58 }
  0xd5   : > { %403 = vmatpush2.xpose.msra.mxu0 %v3303_v47  ;;  %780 = vmatpush2.xpose.msra.mxu1 %v779_v44  ;;  %v808_v14 = vsub.f32 %v3336_v46, %v4218_v28  ;;  %v4053_v44 = vand.u32 4294901760, %v3361_v38  ;;  %v4219_v47 = vand.u32 4294901760, %v3344_v23  ;;  %v4054_v28 = vand.u32 4294901760, %v3378_v12 }
  0xd6   : > { %405 = vmatprep.subr.mxu0 %v3311_v37  ;;  %786 = vmatprep.subr.mxu1 %v785_v53  ;;  %v4220_v53 = vand.u32 4294901760, %v3350_v25 }
  0xd7   : > { %v421_v55 = vsub.f32 %v3344_v23, %v4219_v47  ;;  %v809_v52 = vand.u32 4294901760, %v808_v14  ;;  %v820_v47 = vsub.f32 %v3361_v38, %v4053_v44  ;;  %v437_v23 = vsub.f32 %v3370_v58, %v4222_v24  ;;  %v4232_v24 = vld [vmem:[#allocation17_spill] sm:$0xff] }
  0xd8   : > { %v814_v42 = vsub.f32 %v3350_v25, %v4220_v53  ;;  %v826_v14 = vsub.f32 %v3378_v12, %v4054_v28  ;;  %v4239_v28 = vld [vmem:[#allocation35_spill] sm:$0xff] }
  0xd9   : > { %407 = vmatpush2.xpose.msra.mxu0 %v3326_v7  ;;  %792 = vmatpush2.xpose.msra.mxu1 %v791_v2  ;;  %v431_v7 = vsub.f32 %v3366_v29, %v4221_v0  ;;  %v422_v2 = vand.u32 4294901760, %v421_v55  ;;  %v438_v0 = vand.u32 4294901760, %v437_v23  ;;  %v4225_v23 = vld [vmem:[#allocation21_spill] sm:$0xff] }
  0xda   : > { %409 = vmatprep.subr.mxu0 %v3332_v63  ;;  %798 = vmatprep.subr.mxu1 %v797_v40  ;;  %v815_v53 = vand.u32 4294901760, %v814_v42  ;;  %v821_v40 = vand.u32 4294901760, %v820_v47  ;;  %v827_v55 = vand.u32 4294901760, %v826_v14  ;;  %v4229_v42 = vld [vmem:[#allocation26_spill] sm:$0xff]  ;;  %v4230_v47 = vld [vmem:[#allocation16_spill] sm:$0xff] }
  0xdb   : > { %v432_v44 = vand.u32 4294901760, %v431_v7  ;;  %v4223_v7 = vand.u32 4294901760, %v3140_v33  ;;  %v4234_v14 = vld [vmem:[#allocation18_spill] sm:$0xff] }
  0xdd   : > { %411 = vmatpush2.xpose.msra.mxu0 %v3341_v50  ;;  %804 = vmatpush2.xpose.msra.mxu1 %v803_v32  ;;  %v4228_v32 = vld [vmem:[#allocation15_spill] sm:$0xff] }
  0xde   : > { %810 = vmatprep.subr.mxu1 %v809_v52  ;;  %848 = vmatprep.subr.mxu0 %v2742_v15  ;;  %v4227_v52 = vld [vmem:[#allocation23_spill] sm:$0xff] }
  0xe0   : > { %423 = vmatmul.mubr.f32.vlgmr.msra.gmra.mxu0 %v422_v2  ;;  %v4231_v2 = vld [vmem:[#allocation27_spill] sm:$0xff] }
  0xe1   : > { %816 = vmatpush2.xpose.msra.mxu1 %v815_v53  ;;  %851 = vmatpush1.xpose.msra.mxu0 %v2745_v16  ;;  %v4233_v53 = vld [vmem:[#allocation30_spill] sm:$0xff] }
  0xe2   : > { %822 = vmatprep.subr.mxu1 %v821_v40  ;;  %854 = vmatprep.subr.mxu0 %v2750_v18  ;;  %v4235_v40 = vld [vmem:[#allocation31_spill] sm:$0xff] }
  0xe3   : > { %433 = vmatprep.mubr.f32.mxu0 %v432_v44  ;;  %v4226_v44 = vld [vmem:[#allocation14_spill] sm:$0xff] }
  0xe4   : > { %439 = vmatmul.mubr.f32.gmra.mxu0 %v438_v0  ;;  %v4236_v0 = vld [vmem:[#allocation19_spill] sm:$0xff] }
  0xe5   : > { %828 = vmatpush2.xpose.msra.mxu1 %v827_v55  ;;  %857 = vmatpush1.xpose.msra.mxu0 %v2756_v21  ;;  %v4237_v55 = vld [vmem:[#allocation34_spill] sm:$0xff] }
  0xe6   : > { %860 = vmatprep.subr.mxu0 %v2759_v22  ;;  %1060 = vmatprep.subr.mxu1 %v2728_v3 }
  0xe7   : > { %1040 = vmatprep.mubr.f32.mxu0 %v3140_v33  ;;  %v4224_v33 = vld [vmem:[#allocation13_spill] sm:$0xff] }
  0xe8   : > { %832 = vmatmul.mubr.f32.vlgmr.msra.gmra.mxu1 %v3320_v1  ;;  %v4242_v1 = vld [vmem:[#allocation24_spill] sm:$0xff] }
  0xe9   : > { %863 = vmatpush1.xpose.msra.mxu0 %v2772_v31  ;;  %1062 = vmatpush1.xpose.msra.mxu1 %v2730_v4 }
  0xea   : > { %866 = vmatprep.subr.mxu0 %v2784_v35  ;;  %1064 = vmatprep.subr.mxu1 %v2732_v5 }
  0xeb   : > { %838 = vmatprep.mubr.f32.mxu1 %v3352_v19  ;;  %v4241_v19 = vld [vmem:[#allocation37_spill] sm:$0xff] }
  0xec   : > { %840 = vmatmul.mubr.f32.gmra.mxu1 %v3363_v6  ;;  %v4240_v6 = vld [vmem:[#allocation22_spill] sm:$0xff] }
  0xed   : > { %869 = vmatpush1.xpose.msra.mxu0 %v2799_v45  ;;  %1066 = vmatpush1.xpose.msra.mxu1 %v2734_v9 }
  0xee   : > { %872 = vmatprep.subr.mxu0 %v2804_v49  ;;  %1068 = vmatprep.subr.mxu1 %v2736_v10 }
  0xef   : > { %1190 = vmatprep.mubr.f32.mxu1 %v4223_v7  ;;  %v4238_v7 = vld [vmem:[#allocation20_spill] sm:$0xff] }
  0xf1   : > { %875 = vmatpush1.xpose.msra.mxu0 %v2812_v54  ;;  %1070 = vmatpush1.xpose.msra.mxu1 %v2738_v11 }
  0xf2   : > { %878 = vmatprep.subr.mxu0 %v2822_v59  ;;  %1072 = vmatprep.subr.mxu1 %v2747_v17 }
  0xf5   : > { %881 = vmatpush1.xpose.msra.mxu0 %v2827_v61  ;;  %1074 = vmatpush1.xpose.msra.mxu1 %v2753_v20 }
  0xf6   : > { %884 = vmatprep.subr.mxu0 %v2842_v13  ;;  %1076 = vmatprep.subr.mxu1 %v2765_v26 }
  0xf9   : > { %887 = vmatpush1.xpose.msra.mxu0 %v2854_v36  ;;  %1078 = vmatpush1.xpose.msra.mxu1 %v2769_v30 }
  0xfa   : > { %890 = vmatprep.subr.mxu0 %v2862_v43  ;;  %1080 = vmatprep.subr.mxu1 %v2794_v39 }
  0xfd   : > { %893 = vmatpush1.xpose.msra.mxu0 %v2874_v62  ;;  %1082 = vmatpush1.xpose.msra.mxu1 %v2801_v48 }
  0xfe   : > { %896 = vmatprep.subr.mxu0 %v2882_v27  ;;  %1084 = vmatprep.subr.mxu1 %v2818_v56 }
 0x101   : > { %899 = vmatpush1.xpose.msra.mxu0 %v2894_v8  ;;  %1086 = vmatpush1.xpose.msra.mxu1 %v2824_v60 }
 0x102   : > { %902 = vmatprep.subr.mxu0 %v2902_v51  ;;  %1088 = vmatprep.subr.mxu1 %v4224_v33 }
 0x105   : > { %905 = vmatpush1.xpose.msra.mxu0 %v4225_v23  ;;  %1090 = vmatpush1.xpose.msra.mxu1 %v4226_v44 }
 0x106   : > { %908 = vmatprep.subr.mxu0 %v4227_v52  ;;  %1092 = vmatprep.subr.mxu1 %v4228_v32 }
 0x109   : > { %911 = vmatpush1.xpose.msra.mxu0 %v4229_v42  ;;  %1094 = vmatpush1.xpose.msra.mxu1 %v4230_v47 }
 0x10a   : > { %914 = vmatprep.subr.mxu0 %v4231_v2  ;;  %1096 = vmatprep.subr.mxu1 %v4232_v24  ;;  %v4243_v24 = vld [vmem:[#allocation39_spill] sm:$0xff] }
 0x10d   : > { %917 = vmatpush1.xpose.msra.mxu0 %v4233_v53  ;;  %1098 = vmatpush1.xpose.msra.mxu1 %v4234_v14  ;;  %v4244_v53 = vld [vmem:[#allocation25_spill] sm:$0xff]  ;;  %v4245_v14 = vld [vmem:[#allocation42_spill] sm:$0xff] }
 0x10e   : > { %920 = vmatprep.subr.mxu0 %v4235_v40  ;;  %1100 = vmatprep.subr.mxu1 %v4236_v0  ;;  %v4246_v40 = vld [vmem:[#allocation28_spill] sm:$0xff]  ;;  %v4247_v0 = vld [vmem:[#allocation43_spill] sm:$0xff] }
 0x111   : > { %923 = vmatpush1.xpose.msra.mxu0 %v4237_v55  ;;  %1102 = vmatpush1.xpose.msra.mxu1 %v4238_v7  ;;  %v4248_v55 = vld [vmem:[#allocation29_spill] sm:$0xff]  ;;  %v4249_v7 = vld [vmem:[#allocation46_spill] sm:$0xff] }
 0x112   : > { %926 = vmatprep.subr.mxu0 %v4239_v28  ;;  %1104 = vmatprep.subr.mxu1 %v4240_v6  ;;  %v4250_v28 = vld [vmem:[#allocation32_spill] sm:$0xff]  ;;  %v4251_v6 = vld [vmem:[#allocation47_spill] sm:$0xff] }
 0x115   : > { %929 = vmatpush1.xpose.msra.mxu0 %v4241_v19  ;;  %1106 = vmatpush1.xpose.msra.mxu1 %v4242_v1  ;;  %v4252_v19 = vld [vmem:[#allocation33_spill] sm:$0xff]  ;;  %v4253_v1 = vld [vmem:[#allocation50_spill] sm:$0xff] }
 0x116   : > { %932 = vmatprep.subr.mxu0 %v4243_v24  ;;  %1108 = vmatprep.subr.mxu1 %v4244_v53  ;;  %v4254_v24 = vld [vmem:[#allocation36_spill] sm:$0xff]  ;;  %v4255_v53 = vld [vmem:[#allocation51_spill] sm:$0xff] }
 0x119   : > { %935 = vmatpush1.xpose.msra.mxu0 %v4245_v14  ;;  %1110 = vmatpush1.xpose.msra.mxu1 %v4246_v40  ;;  %v4256_v14 = vld [vmem:[#allocation38_spill] sm:$0xff]  ;;  %v4257_v40 = vld [vmem:[#allocation53_spill] sm:$0xff] }
 0x11a   : > { %938 = vmatprep.subr.mxu0 %v4247_v0  ;;  %1112 = vmatprep.subr.mxu1 %v4248_v55  ;;  %v4258_v0 = vld [vmem:[#allocation40_spill] sm:$0xff]  ;;  %v4259_v55 = vld [vmem:[#allocation55_spill] sm:$0xff] }
 0x11d   : > { %941 = vmatpush1.xpose.msra.mxu0 %v4249_v7  ;;  %1114 = vmatpush1.xpose.msra.mxu1 %v4250_v28  ;;  %v4260_v7 = vld [vmem:[#allocation41_spill] sm:$0xff]  ;;  %v4261_v28 = vld [vmem:[#allocation56_spill] sm:$0xff] }
 0x11e   : > { %944 = vmatprep.subr.mxu0 %v4251_v6  ;;  %1116 = vmatprep.subr.mxu1 %v4252_v19  ;;  %v4262_v6 = vld [vmem:[#allocation44_spill] sm:$0xff]  ;;  %v4263_v19 = vld [vmem:[#allocation59_spill] sm:$0xff] }
 0x121   : > { %947 = vmatpush2.xpose.msra.mxu0 %v4253_v1  ;;  %1118 = vmatpush1.xpose.msra.mxu1 %v4254_v24  ;;  %v4264_v1 = vld [vmem:[#allocation45_spill] sm:$0xff]  ;;  %v4265_v24 = vld [vmem:[#allocation62_spill] sm:$0xff] }
 0x122   : > { %950 = vmatprep.subr.mxu0 %v4255_v53  ;;  %1120 = vmatprep.subr.mxu1 %v4256_v14  ;;  %v4266_v53 = vld [vmem:[#allocation48_spill] sm:$0xff] }
 0x125   : > { %953 = vmatpush2.xpose.msra.mxu0 %v4257_v40  ;;  %1122 = vmatpush1.xpose.msra.mxu1 %v4258_v0  ;;  %v4267_v40 = vld [vmem:[#allocation49_spill] sm:$0xff]  ;;  %v4268_v0 = vld [vmem:[#allocation67_spill] sm:$0xff] }
 0x126   : > { %956 = vmatprep.subr.mxu0 %v4259_v55  ;;  %1124 = vmatprep.subr.mxu1 %v4260_v7  ;;  %v4269_v55 = vld [vmem:[#allocation52_spill] sm:$0xff] }
 0x127   : > { %v4270_v7 = vld [vmem:[#allocation68_spill] sm:$0xff] }
 0x129   : > { %959 = vmatpush2.xpose.msra.mxu0 %v4261_v28  ;;  %1126 = vmatpush2.xpose.msra.mxu1 %v4262_v6  ;;  %v4271_v28 = vld [vmem:[#allocation54_spill] sm:$0xff]  ;;  %v4272_v6 = vld [vmem:[#allocation71_spill] sm:$0xff] }
 0x12a   : > { %962 = vmatprep.subr.mxu0 %v4263_v19  ;;  %1128 = vmatprep.subr.mxu1 %v4264_v1  ;;  %v4273_v19 = vld [vmem:[#allocation57_spill] sm:$0xff]  ;;  %v4274_v1 = vld [vmem:[#allocation72_spill] sm:$0xff] }
 0x12d   : > { %965 = vmatpush2.xpose.msra.mxu0 %v4265_v24  ;;  %1130 = vmatpush2.xpose.msra.mxu1 %v4266_v53  ;;  %v4275_v24 = vld [vmem:[#allocation58_spill] sm:$0xff] }
 0x12e   : > { %968 = vmatprep.subr.mxu0 %v3123_v57  ;;  %1132 = vmatprep.subr.mxu1 %v4267_v40  ;;  %v4276_v53 = vld [vmem:[#allocation74_spill] sm:$0xff]  ;;  %v4277_v57 = vld [vmem:[#allocation60_spill] sm:$0xff] }
 0x12f   : > { %v4278_v40 = vld [vmem:[#allocation76_spill] sm:$0xff] }
 0x131   : > { %971 = vmatpush2.xpose.msra.mxu0 %v4268_v0  ;;  %1134 = vmatpush2.xpose.msra.mxu1 %v4269_v55  ;;  %v4279_v0 = vld [vmem:[#allocation61_spill] sm:$0xff]  ;;  %v4280_v55 = vld [vmem:[#allocation79_spill] sm:$0xff] }
 0x132   : > { %974 = vmatprep.subr.mxu0 %v4270_v7  ;;  %1136 = vmatprep.subr.mxu1 %v4271_v28  ;;  %v4281_v7 = vld [vmem:[#allocation65_spill] sm:$0xff]  ;;  %v4282_v28 = vld [vmem:[#allocation80_spill] sm:$0xff] }
 0x135   : > { %977 = vmatpush2.xpose.msra.mxu0 %v4272_v6  ;;  %1138 = vmatpush2.xpose.msra.mxu1 %v4273_v19  ;;  %v4283_v6 = vld [vmem:[#allocation66_spill] sm:$0xff]  ;;  %v4284_v19 = vld [vmem:[#allocation83_spill] sm:$0xff] }
 0x136   : > { %980 = vmatprep.subr.mxu0 %v4274_v1  ;;  %1140 = vmatprep.subr.mxu1 %v4275_v24  ;;  %v4285_v1 = vld [vmem:[#allocation69_spill] sm:$0xff]  ;;  %v4286_v24 = vld [vmem:[#allocation84_spill] sm:$0xff] }
 0x139   : > { %983 = vmatpush2.xpose.msra.mxu0 %v4276_v53  ;;  %1142 = vmatpush2.xpose.msra.mxu1 %v4277_v57  ;;  %v4287_v53 = vld [vmem:[#allocation70_spill] sm:$0xff]  ;;  %v4288_v57 = vld [vmem:[#allocation87_spill] sm:$0xff] }
 0x13a   : > { %986 = vmatprep.subr.mxu0 %v4278_v40  ;;  %1144 = vmatprep.subr.mxu1 %v4279_v0  ;;  %v4289_v40 = vld [vmem:[#allocation73_spill] sm:$0xff]  ;;  %v4290_v0 = vld [vmem:[#allocation88_spill] sm:$0xff] }
 0x13d   : > { %989 = vmatpush2.xpose.msra.mxu0 %v4280_v55  ;;  %1146 = vmatpush2.xpose.msra.mxu1 %v4281_v7  ;;  %v4291_v55 = vld [vmem:[#allocation75_spill] sm:$0xff] }
 0x13e   : > { %992 = vmatprep.subr.mxu0 %v4282_v28  ;;  %1148 = vmatprep.subr.mxu1 %v4283_v6  ;;  %v4292_v7 = vld [vmem:[#allocation91_spill] sm:$0xff]  ;;  %v4293_v28 = vld [vmem:[#allocation77_spill] sm:$0xff]  ;;  %v4294_v6 = vld [vmem:[#allocation92_spill] sm:$0xff] }
 0x141   : > { %995 = vmatpush2.xpose.msra.mxu0 %v4284_v19  ;;  %1150 = vmatpush2.xpose.msra.mxu1 %v4285_v1  ;;  %v4295_v19 = vld [vmem:[#allocation78_spill] sm:$0xff] }
 0x142   : > { %998 = vmatprep.subr.mxu0 %v4286_v24  ;;  %1152 = vmatprep.subr.mxu1 %v4287_v53  ;;  %v4296_v1 = vld [vmem:[#allocation94_spill] sm:$0xff]  ;;  %v4297_v24 = vld [vmem:[#allocation81_spill] sm:$0xff]  ;;  %v4298_v53 = vld [vmem:[#allocation95_spill] sm:$0xff] }
 0x145   : > { %1001 = vmatpush2.xpose.msra.mxu0 %v4288_v57  ;;  %1154 = vmatpush2.xpose.msra.mxu1 %v4289_v40  ;;  %v4299_v57 = vld [vmem:[#allocation82_spill] sm:$0xff]  ;;  %v4300_v40 = vld [vmem:[#allocation97_spill] sm:$0xff] }
 0x146   : > { %1004 = vmatprep.subr.mxu0 %v4290_v0  ;;  %1156 = vmatprep.subr.mxu1 %v4291_v55  ;;  %v4301_v0 = vld [vmem:[#allocation85_spill] sm:$0xff] }
 0x149   : > { %1007 = vmatpush2.xpose.msra.mxu0 %v4292_v7  ;;  %1158 = vmatpush2.xpose.msra.mxu1 %v4293_v28  ;;  %v4302_v7 = vld [vmem:[#allocation86_spill] sm:$0xff] }
 0x14a   : > { %1010 = vmatprep.subr.mxu0 %v4294_v6  ;;  %1160 = vmatprep.subr.mxu1 %v4295_v19  ;;  %v4303_v6 = vld [vmem:[#allocation89_spill] sm:$0xff] }
 0x14d   : > { %1013 = vmatpush2.xpose.msra.mxu0 %v4296_v1  ;;  %1162 = vmatpush2.xpose.msra.mxu1 %v4297_v24  ;;  %v4304_v1 = vld [vmem:[#allocation90_spill] sm:$0xff] }
 0x14e   : > { %1016 = vmatprep.subr.mxu0 %v4298_v53  ;;  %1164 = vmatprep.subr.mxu1 %v4299_v57  ;;  %v4305_v53 = vld [vmem:[#allocation93_spill] sm:$0xff] }
 0x151   : > { %1019 = vmatpush2.xpose.msra.mxu0 %v4300_v40  ;;  %1166 = vmatpush2.xpose.msra.mxu1 %v4301_v0  ;;  %v4306_v40 = vld [vmem:[#allocation96_spill] sm:$0xff] }
 0x152   : > { %1022 = vmatprep.subr.mxu0 %v3314_v34  ;;  %1168 = vmatprep.subr.mxu1 %v4302_v7  ;;  %v4307_v34 = vld [vmem:[#allocation98_spill] sm:$0xff] }
 0x155   : > { %1025 = vmatpush2.xpose.msra.mxu0 %v3329_v41  ;;  %1170 = vmatpush2.xpose.msra.mxu1 %v4303_v6  ;;  %v4308_v6 = vand.u32 4294901760, %v2742_v15  ;;  %v4313_v15 = vand.u32 4294901760, %v2756_v21  ;;  %v4319_v21 = vand.u32 4294901760, %v2784_v35  ;;  %v4325_v35 = vand.u32 4294901760, %v2827_v61  ;;  %v4341_v61 = vld [vmem:[#allocation31_spill] sm:$0xff] }
 0x156   : > { %1028 = vmatprep.subr.mxu0 %v3336_v46  ;;  %1172 = vmatprep.subr.mxu1 %v4304_v1  ;;  %v4309_v46 = vld [vmem:[#allocation103_spill] sm:$0xff]  ;;  %v4310_v1 = vld [vmem:[#allocation101_spill] sm:$0xff] }
 0x159   : > { %1031 = vmatpush2.xpose.msra.mxu0 %v3350_v25  ;;  %1174 = vmatpush2.xpose.msra.mxu1 %v4305_v53  ;;  %v4311_v25 = vand.u32 4294901760, %v2745_v16  ;;  %v4315_v16 = vld [vmem:[#allocation64_spill] sm:$0xff] }
 0x15a   : > { %1034 = vmatprep.subr.mxu0 %v3361_v38  ;;  %1176 = vmatprep.subr.mxu1 %v4306_v40 }
 0x15d   : > { %1037 = vmatpush2.xpose.msra.mxu0 %v3378_v12  ;;  %1178 = vmatpush2.xpose.msra.mxu1 %v4307_v34  ;;  %v4312_v12 = vand.u32 4294901760, %v2750_v18  ;;  %v4317_v18 = vand.u32 4294901760, %v2772_v31  ;;  %v4322_v31 = vand.u32 4294901760, %v2804_v49  ;;  %v4336_v49 = vand.u32 4294901760, %v4231_v2  ;;  %v4359_v2 = vld [vmem:[#allocation43_spill] sm:$0xff] }
 0x15e   : > { %1180 = vmatprep.subr.mxu1 %v3311_v37  ;;  %1215 = vmatprep.subr.mxu0 %v4308_v6  ;;  %v4314_v6 = vand.u32 4294901760, %v2759_v22  ;;  %v4321_v22 = vand.u32 4294901760, %v2799_v45  ;;  %v4334_v45 = vand.u32 4294901760, %v4227_v52  ;;  %v4355_v52 = vld [vmem:[#allocation25_spill] sm:$0xff] }
 0x160   : > { %1043 = vmatmul.mubr.f32.vlgmr.msra.gmra.mxu0 %v4309_v46 }
 0x161   : > { %1182 = vmatpush2.xpose.msra.mxu1 %v4310_v1  ;;  %1219 = vmatpush1.xpose.msra.mxu0 %v4311_v25  ;;  %v4316_v25 = vand.u32 4294901760, %v4309_v46  ;;  %v4350_v46 = vld [vmem:[#allocation37_spill] sm:$0xff] }
 0x162   : > { %1050 = vmatprep.mubr.f32.mxu0 %v3366_v29  ;;  %1184 = vmatprep.subr.mxu1 %v3332_v63 }
 0x163   : > { %1223 = vmatprep.subr.mxu0 %v4312_v12  ;;  %v4318_v12 = vand.u32 4294901760, %v3366_v29  ;;  %v4351_v29 = vand.u32 4294901760, %v4350_v46 }
 0x164   : > { %1053 = vmatmul.mubr.f32.gmra.mxu0 %v3370_v58 }
 0x165   : > { %1186 = vmatpush2.xpose.msra.mxu1 %v3341_v50  ;;  %1227 = vmatpush1.xpose.msra.mxu0 %v4313_v15  ;;  %v4360_v15 = vand.u32 4294901760, %v4359_v2 }
 0x166   : > { %1231 = vmatprep.subr.mxu0 %v4314_v6  ;;  %1486 = vmatprep.subr.mxu1 %v2728_v3  ;;  %v4320_v3 = vand.u32 4294901760, %v3370_v58  ;;  %v4349_v58 = vld [vmem:[#allocation22_spill] sm:$0xff]  ;;  %v4361_v6 = vld [vmem:[#allocation29_spill] sm:$0xff] }
 0x167   : > { %1469 = vmatprep.mubr.f32.mxu0 %v4315_v16 }
 0x168   : > { %1194 = vmatmul.mubr.f32.vlgmr.msra.gmra.mxu1 %v4316_v25 }
 0x169   : > { %1235 = vmatpush1.xpose.msra.mxu0 %v4317_v18  ;;  %1488 = vmatpush1.xpose.msra.mxu1 %v2730_v4  ;;  %v4323_v4 = vand.u32 4294901760, %v2812_v54  ;;  %v4337_v54 = vld [vmem:[#allocation17_spill] sm:$0xff]  ;;  %v4364_v18 = vld [vmem:[#allocation32_spill] sm:$0xff] }
 0x16a   : > { %1202 = vmatprep.mubr.f32.mxu1 %v4318_v12  ;;  %1239 = vmatprep.subr.mxu0 %v4319_v21  ;;  %v4365_v12 = vld [vmem:[#allocation47_spill] sm:$0xff] }
 0x16b   : > { %1490 = vmatprep.subr.mxu1 %v2732_v5  ;;  %v4324_v5 = vand.u32 4294901760, %v2822_v59  ;;  %v4366_v21 = vand.u32 4294901760, %v4365_v12 }
 0x16c   : > { %1206 = vmatmul.mubr.f32.gmra.mxu1 %v4320_v3  ;;  %v4367_v3 = vld [vmem:[#allocation33_spill] sm:$0xff] }
 0x16d   : > { %1243 = vmatpush1.xpose.msra.mxu0 %v4321_v22  ;;  %1492 = vmatpush1.xpose.msra.mxu1 %v2734_v9  ;;  %v4326_v9 = vand.u32 4294901760, %v2842_v13  ;;  %v4343_v13 = vld [vmem:[#allocation19_spill] sm:$0xff]  ;;  %v4368_v22 = vld [vmem:[#allocation50_spill] sm:$0xff] }
 0x16e   : > { %1247 = vmatprep.subr.mxu0 %v4322_v31  ;;  %1494 = vmatprep.subr.mxu1 %v2736_v10  ;;  %v4327_v10 = vand.u32 4294901760, %v2854_v36  ;;  %v4344_v36 = vld [vmem:[#allocation34_spill] sm:$0xff]  ;;  %v4369_v31 = vand.u32 4294901760, %v4368_v22 }
 0x16f   : > { %1614 = vmatprep.mubr.f32.mxu1 %v4315_v16  ;;  %v4362_v16 = vld [vmem:[#allocation46_spill] sm:$0xff] }
 0x170   : > { %v4363_v25 = vand.u32 4294901760, %v4362_v16 }
 0x171   : > { %1251 = vmatpush1.xpose.msra.mxu0 %v4323_v4  ;;  %1496 = vmatpush1.xpose.msra.mxu1 %v2738_v11  ;;  %v4328_v11 = vand.u32 4294901760, %v2862_v43  ;;  %v4345_v43 = vand.u32 4294901760, %v4344_v36  ;;  %v4370_v4 = vld [vmem:[#allocation36_spill] sm:$0xff] }
 0x172   : > { %1255 = vmatprep.subr.mxu0 %v4324_v5  ;;  %1498 = vmatprep.subr.mxu1 %v2747_v17  ;;  %v4329_v17 = vand.u32 4294901760, %v2874_v62  ;;  %v4347_v62 = vld [vmem:[#allocation35_spill] sm:$0xff] }
 0x173   : > { %v4371_v5 = vld [vmem:[#allocation51_spill] sm:$0xff] }
 0x175   : > { %1259 = vmatpush1.xpose.msra.mxu0 %v4325_v35  ;;  %1500 = vmatpush1.xpose.msra.mxu1 %v2753_v20  ;;  %v4330_v20 = vand.u32 4294901760, %v2882_v27  ;;  %v4348_v27 = vand.u32 4294901760, %v4347_v62  ;;  %v4372_v35 = vand.u32 4294901760, %v4371_v5 }
 0x176   : > { %1263 = vmatprep.subr.mxu0 %v4326_v9  ;;  %1502 = vmatprep.subr.mxu1 %v2765_v26  ;;  %v4331_v26 = vand.u32 4294901760, %v2894_v8  ;;  %v4342_v8 = vand.u32 4294901760, %v4341_v61  ;;  %v4373_v9 = vld [vmem:[#allocation53_spill] sm:$0xff] }
 0x179   : > { %1267 = vmatpush1.xpose.msra.mxu0 %v4327_v10  ;;  %1504 = vmatpush1.xpose.msra.mxu1 %v2769_v30  ;;  %v4332_v30 = vand.u32 4294901760, %v2902_v51  ;;  %v4346_v51 = vld [vmem:[#allocation20_spill] sm:$0xff]  ;;  %v4374_v10 = vand.u32 4294901760, %v4373_v9  ;;  %v4421_v9 = vld [vmem:[#allocation87_spill] sm:$0xff] }
 0x17a   : > { %1271 = vmatprep.subr.mxu0 %v4328_v11  ;;  %1506 = vmatprep.subr.mxu1 %v2794_v39  ;;  %v4333_v39 = vand.u32 4294901760, %v4225_v23  ;;  %v4353_v23 = vld [vmem:[#allocation39_spill] sm:$0xff]  ;;  %v4375_v11 = vld [vmem:[#allocation40_spill] sm:$0xff] }
 0x17d   : > { %1275 = vmatpush1.xpose.msra.mxu0 %v4329_v17  ;;  %1508 = vmatpush1.xpose.msra.mxu1 %v2801_v48  ;;  %v4335_v48 = vand.u32 4294901760, %v4229_v42  ;;  %v4376_v17 = vld [vmem:[#allocation55_spill] sm:$0xff] }
 0x17e   : > { %1279 = vmatprep.subr.mxu0 %v4330_v20  ;;  %1510 = vmatprep.subr.mxu1 %v2818_v56  ;;  %v4338_v56 = vld [vmem:[#allocation30_spill] sm:$0xff]  ;;  %v4377_v20 = vand.u32 4294901760, %v4376_v17  ;;  %v4424_v17 = vld [vmem:[#allocation88_spill] sm:$0xff] }
 0x17f   : > { %v4339_v59 = vand.u32 4294901760, %v4338_v56 }
 0x181   : > { %1283 = vmatpush1.xpose.msra.mxu0 %v4331_v26  ;;  %1512 = vmatpush1.xpose.msra.mxu1 %v2824_v60  ;;  %v4340_v60 = vld [vmem:[#allocation18_spill] sm:$0xff]  ;;  %v4378_v26 = vld [vmem:[#allocation41_spill] sm:$0xff] }
 0x182   : > { %1287 = vmatprep.subr.mxu0 %v4332_v30  ;;  %1514 = vmatprep.subr.mxu1 %v4224_v33  ;;  %v4352_v33 = vld [vmem:[#allocation24_spill] sm:$0xff] }
 0x183   : > { %v4379_v30 = vld [vmem:[#allocation56_spill] sm:$0xff] }
 0x185   : > { %1291 = vmatpush1.xpose.msra.mxu0 %v4333_v39  ;;  %1516 = vmatpush1.xpose.msra.mxu1 %v4226_v44  ;;  %v4354_v44 = vand.u32 4294901760, %v4353_v23  ;;  %v4380_v39 = vand.u32 4294901760, %v4379_v30 }
 0x186   : > { %1295 = vmatprep.subr.mxu0 %v4334_v45  ;;  %1518 = vmatprep.subr.mxu1 %v4228_v32  ;;  %v4356_v32 = vld [vmem:[#allocation42_spill] sm:$0xff]  ;;  %v4381_v45 = vld [vmem:[#allocation44_spill] sm:$0xff] }
 0x187   : > { %v4357_v42 = vand.u32 4294901760, %v4356_v32 }
 0x189   : > { %1299 = vmatpush1.xpose.msra.mxu0 %v4335_v48  ;;  %1520 = vmatpush1.xpose.msra.mxu1 %v4230_v47  ;;  %v4358_v47 = vld [vmem:[#allocation28_spill] sm:$0xff]  ;;  %v4382_v48 = vld [vmem:[#allocation59_spill] sm:$0xff] }
 0x18a   : > { %1303 = vmatprep.subr.mxu0 %v4336_v49  ;;  %1522 = vmatprep.subr.mxu1 %v4337_v54  ;;  %v4383_v49 = vand.u32 4294901760, %v4382_v48  ;;  %v4384_v54 = vld [vmem:[#allocation45_spill] sm:$0xff]  ;;  %v4430_v48 = vld [vmem:[#allocation94_spill] sm:$0xff] }
 0x18d   : > { %1307 = vmatpush1.xpose.msra.mxu0 %v4339_v59  ;;  %1524 = vmatpush1.xpose.msra.mxu1 %v4340_v60  ;;  %v4387_v59 = vld [vmem:[#allocation48_spill] sm:$0xff]  ;;  %v4388_v60 = vld [vmem:[#allocation63_spill] sm:$0xff] }
 0x18e   : > { %1311 = vmatprep.subr.mxu0 %v4342_v8  ;;  %1526 = vmatprep.subr.mxu1 %v4343_v13  ;;  %v4389_v61 = vand.u32 4294901760, %v4388_v60  ;;  %v4390_v8 = vld [vmem:[#allocation49_spill] sm:$0xff]  ;;  %v4391_v13 = vld [vmem:[#allocation67_spill] sm:$0xff] }
 0x18f   : > { %v4392_v36 = vand.u32 4294901760, %v4391_v13  ;;  %v4439_v60 = vld [vmem:[#allocation89_spill] sm:$0xff] }
 0x191   : > { %1315 = vmatpush1.xpose.msra.mxu0 %v4345_v43  ;;  %1528 = vmatpush1.xpose.msra.mxu1 %v4346_v51  ;;  %v4393_v43 = vld [vmem:[#allocation52_spill] sm:$0xff] }
 0x192   : > { %1319 = vmatprep.subr.mxu0 %v4348_v27  ;;  %1530 = vmatprep.subr.mxu1 %v4349_v58  ;;  %v4394_v51 = vld [vmem:[#allocation68_spill] sm:$0xff]  ;;  %v4396_v27 = vld [vmem:[#allocation54_spill] sm:$0xff]  ;;  %v4397_v58 = vld [vmem:[#allocation71_spill] sm:$0xff] }
 0x193   : > { %v4395_v62 = vand.u32 4294901760, %v4394_v51  ;;  %v4398_v46 = vand.u32 4294901760, %v4397_v58 }
 0x195   : > { %1323 = vmatpush1.xpose.msra.mxu0 %v4351_v29  ;;  %1532 = vmatpush1.xpose.msra.mxu1 %v4352_v33  ;;  %v4399_v29 = vld [vmem:[#allocation57_spill] sm:$0xff]  ;;  %v4400_v33 = vld [vmem:[#allocation72_spill] sm:$0xff] }
 0x196   : > { %1327 = vmatprep.subr.mxu0 %v4354_v44  ;;  %1534 = vmatprep.subr.mxu1 %v4355_v52  ;;  %v4401_v23 = vand.u32 4294901760, %v4400_v33  ;;  %v4402_v44 = vld [vmem:[#allocation58_spill] sm:$0xff]  ;;  %v1630_v33 = vld [vmem:[#allocation5] sm:$0xff] }
 0x197   : > { %v4403_v52 = vld [vmem:[#allocation74_spill] sm:$0xff] }
 0x198   : > { %v4404_v32 = vand.u32 4294901760, %v4403_v52  ;;  %v1634_v52 = vsel %vm1632_vm0, %v1630_v33, 0 }
 0x199   : > { %1331 = vmatpush1.xpose.msra.mxu0 %v4357_v42  ;;  %1536 = vmatpush1.xpose.msra.mxu1 %v4358_v47  ;;  %v4405_v42 = vld [vmem:[#allocation60_spill] sm:$0xff] }
 0x19a   : > { %1335 = vmatprep.subr.mxu0 %v4360_v15  ;;  %1538 = vmatprep.subr.mxu1 %v4361_v6  ;;  %v4406_v47 = vld [vmem:[#allocation76_spill] sm:$0xff]  ;;  %v4408_v15 = vld [vmem:[#allocation61_spill] sm:$0xff]  ;;  %v4409_v6 = vld [vmem:[#allocation79_spill] sm:$0xff] }
 0x19b   : > { %v4407_v2 = vand.u32 4294901760, %v4406_v47  ;;  %v4410_v16 = vand.u32 4294901760, %v4409_v6  ;;  %v1631_v47 = vld [vmem:[#allocation5 + $0x8] sm:$0xff]  ;;  %v3754_v6 = vand.u32 4294901760, %v1634_v52 }
 0x19d   : > { %1339 = vmatpush1.xpose.msra.mxu0 %v4363_v25  ;;  %1540 = vmatpush1.xpose.msra.mxu1 %v4364_v18  ;;  %v4411_v25 = vld [vmem:[#allocation65_spill] sm:$0xff]  ;;  %v4412_v18 = vld [vmem:[#allocation80_spill] sm:$0xff] }
 0x19e   : > { %1343 = vmatprep.subr.mxu0 %v4366_v21  ;;  %1542 = vmatprep.subr.mxu1 %v4367_v3  ;;  %v4413_v12 = vand.u32 4294901760, %v4412_v18  ;;  %v4414_v21 = vld [vmem:[#allocation66_spill] sm:$0xff]  ;;  %v4415_v3 = vld [vmem:[#allocation83_spill] sm:$0xff] }
 0x19f   : > { %v4416_v22 = vand.u32 4294901760, %v4415_v3 }
 0x1a1   : > { %1347 = vmatpush2.xpose.msra.mxu0 %v4369_v31  ;;  %1544 = vmatpush1.xpose.msra.mxu1 %v4370_v4  ;;  %v4417_v31 = vld [vmem:[#allocation69_spill] sm:$0xff]  ;;  %v4418_v4 = vld [vmem:[#allocation84_spill] sm:$0xff] }
 0x1a2   : > { %1351 = vmatprep.subr.mxu0 %v4372_v35  ;;  %1546 = vmatprep.subr.mxu1 %v4256_v14  ;;  %v4385_v14 = vld [vmem:[#allocation62_spill] sm:$0xff]  ;;  %v4419_v5 = vand.u32 4294901760, %v4418_v4 }
 0x1a3   : > { %v4386_v56 = vand.u32 4294901760, %v4385_v14  ;;  %v4420_v35 = vld [vmem:[#allocation70_spill] sm:$0xff] }
 0x1a5   : > { %1355 = vmatpush2.xpose.msra.mxu0 %v4374_v10  ;;  %1548 = vmatpush1.xpose.msra.mxu1 %v4375_v11  ;;  %v4422_v10 = vand.u32 4294901760, %v4421_v9  ;;  %v4423_v11 = vld [vmem:[#allocation73_spill] sm:$0xff] }
 0x1a6   : > { %1359 = vmatprep.subr.mxu0 %v4377_v20  ;;  %1550 = vmatprep.subr.mxu1 %v4378_v26  ;;  %v4425_v20 = vand.u32 4294901760, %v4424_v17  ;;  %v4426_v26 = vld [vmem:[#allocation91_spill] sm:$0xff] }
 0x1a7   : > { %v4427_v30 = vand.u32 4294901760, %v4426_v26 }
 0x1a9   : > { %1363 = vmatpush2.xpose.msra.mxu0 %v4380_v39  ;;  %1552 = vmatpush2.xpose.msra.mxu1 %v4381_v45  ;;  %v4428_v39 = vld [vmem:[#allocation92_spill] sm:$0xff] }
 0x1aa   : > { %1367 = vmatprep.subr.mxu0 %v4383_v49  ;;  %1554 = vmatprep.subr.mxu1 %v4384_v54  ;;  %v4429_v45 = vand.u32 4294901760, %v4428_v39  ;;  %v4431_v49 = vand.u32 4294901760, %v4430_v48  ;;  %v4432_v54 = vld [vmem:[#allocation95_spill] sm:$0xff] }
 0x1ab   : > { %v4433_v14 = vand.u32 4294901760, %v4432_v54 }
 0x1ad   : > { %1371 = vmatpush2.xpose.msra.mxu0 %v4386_v56  ;;  %1556 = vmatpush2.xpose.msra.mxu1 %v4387_v59 }
 0x1ae   : > { %1375 = vmatprep.subr.mxu0 %v4389_v61  ;;  %1558 = vmatprep.subr.mxu1 %v4390_v8  ;;  %v4442_v8 = vld [vmem:[#allocation90_spill] sm:$0xff] }
 0x1b1   : > { %1379 = vmatpush2.xpose.msra.mxu0 %v4392_v36  ;;  %1560 = vmatpush2.xpose.msra.mxu1 %v4393_v43  ;;  %v4448_v36 = vld [vmem:[#allocation100_spill] sm:$0xff]  ;;  %v4449_v43 = vld [vmem:[#allocation105_spill] sm:$0xff] }
 0x1b2   : > { %1383 = vmatprep.subr.mxu0 %v4395_v62  ;;  %1562 = vmatprep.subr.mxu1 %v4396_v27 }
 0x1b5   : > { %1387 = vmatpush2.xpose.msra.mxu0 %v4398_v46  ;;  %1564 = vmatpush2.xpose.msra.mxu1 %v4399_v29 }
 0x1b6   : > { %1391 = vmatprep.subr.mxu0 %v4401_v23  ;;  %1566 = vmatprep.subr.mxu1 %v4402_v44 }
 0x1b9   : > { %1395 = vmatpush2.xpose.msra.mxu0 %v4404_v32  ;;  %1568 = vmatpush2.xpose.msra.mxu1 %v4405_v42 }
 0x1ba   : > { %1399 = vmatprep.subr.mxu0 %v4407_v2  ;;  %1570 = vmatprep.subr.mxu1 %v4408_v15 }
 0x1bd   : > { %1403 = vmatpush2.xpose.msra.mxu0 %v4410_v16  ;;  %1572 = vmatpush2.xpose.msra.mxu1 %v4411_v25 }
 0x1be   : > { %1407 = vmatprep.subr.mxu0 %v4413_v12  ;;  %1574 = vmatprep.subr.mxu1 %v4414_v21  ;;  %v1637_v12 = vsel %vm1632_vm0, %v1631_v47, 0 }
 0x1c1   : > { %1411 = vmatpush2.xpose.msra.mxu0 %v4416_v22  ;;  %1576 = vmatpush2.xpose.msra.mxu1 %v4417_v31 }
 0x1c2   : > { %1415 = vmatprep.subr.mxu0 %v4419_v5  ;;  %1578 = vmatprep.subr.mxu1 %v4420_v35  ;;  %v3757_v5 = vsub.f32 %v1634_v52, %v3754_v6 }
 0x1c5   : > { %1419 = vmatpush2.xpose.msra.mxu0 %v4422_v10  ;;  %1580 = vmatpush2.xpose.msra.mxu1 %v4423_v11  ;;  %v3759_v11 = vand.u32 4294901760, %v1637_v12 }
 0x1c6   : > { %1423 = vmatprep.subr.mxu0 %v4425_v20  ;;  %1582 = vmatprep.subr.mxu1 %v4291_v55  ;;  %v4434_v55 = vld [vmem:[#allocation97_spill] sm:$0xff] }
 0x1c7   : > { %v4435_v56 = vand.u32 4294901760, %v4434_v55 }
 0x1c9   : > { %1427 = vmatpush2.xpose.msra.mxu0 %v4427_v30  ;;  %1584 = vmatpush2.xpose.msra.mxu1 %v4293_v28  ;;  %v4436_v28 = vld [vmem:[#allocation99_spill] sm:$0xff] }
 0x1ca   : > { %1431 = vmatprep.subr.mxu0 %v4429_v45  ;;  %1586 = vmatprep.subr.mxu1 %v4295_v19  ;;  %v4437_v59 = vand.u32 4294901760, %v4436_v28  ;;  %v4438_v19 = vand.u32 4294901760, %v3329_v41 }
 0x1cd   : > { %1435 = vmatpush2.xpose.msra.mxu0 %v4431_v49  ;;  %1588 = vmatpush2.xpose.msra.mxu1 %v4297_v24  ;;  %v4440_v24 = vld [vmem:[#allocation102_spill] sm:$0xff]  ;;  %v1710_v49 = vand.u32 4294901760, %v3757_v5 }
 0x1ce   : > { %1439 = vmatprep.subr.mxu0 %v4433_v14  ;;  %1590 = vmatprep.subr.mxu1 %v4299_v57  ;;  %v4441_v61 = vand.u32 4294901760, %v4440_v24  ;;  %v4443_v57 = vld [vmem:[#allocation104_spill] sm:$0xff] }
 0x1cf   : > { %v4444_v13 = vand.u32 4294901760, %v4443_v57 }
 0x1d1   : > { %1443 = vmatpush2.xpose.msra.mxu0 %v4435_v56  ;;  %1592 = vmatpush2.xpose.msra.mxu1 %v4301_v0  ;;  %v4445_v0 = vand.u32 4294901760, %v3361_v38  ;;  %v3763_v56 = vsub.f32 %v1637_v12, %v3759_v11 }
 0x1d2   : > { %1447 = vmatprep.subr.mxu0 %v4437_v59  ;;  %1594 = vmatprep.subr.mxu1 %v4302_v7  ;;  %v4446_v7 = vld [vmem:[#allocation107_spill] sm:$0xff] }
 0x1d3   : > { %v4447_v41 = vand.u32 4294901760, %v4446_v7  ;;  %v1721_v7 = vand.u32 4294901760, %v3763_v56 }
 0x1d5   : > { %1451 = vmatpush2.xpose.msra.mxu0 %v4438_v19  ;;  %1596 = vmatpush2.xpose.msra.mxu1 %v4439_v60 }
 0x1d6   : > { %1455 = vmatprep.subr.mxu0 %v4441_v61  ;;  %1598 = vmatprep.subr.mxu1 %v4442_v8  ;;  %v1711_v8 = vsub.f32 %v3757_v5, %v1710_v49 }
 0x1d9   : > { %1459 = vmatpush2.xpose.msra.mxu0 %v4444_v13  ;;  %1600 = vmatpush2.xpose.msra.mxu1 %v4305_v53  ;;  %v4450_v53 = vld [vmem:[#allocation106_spill] sm:$0xff] }
 0x1da   : > { %1463 = vmatprep.subr.mxu0 %v4445_v0  ;;  %1602 = vmatprep.subr.mxu1 %v4306_v40  ;;  %v833_v40 = vpop.f32.mrf.mxu1 }
 0x1dc   : > { %v835_v51 = vpop.f32.mrf.mxu1 }
 0x1dd   : > { %1467 = vmatpush2.xpose.msra.mxu0 %v4447_v41  ;;  %1604 = vmatpush2.xpose.msra.mxu1 %v4307_v34  ;;  %v2544_v34 = vmov 0.0  }
 0x1de   : > { %1606 = vmatprep.subr.mxu1 %v3311_v37  ;;  %v841_v27 = vpop.f32.mrf.mxu1 }
 0x1e0   : > { %1471 = vmatmul.mubr.f32.vlgmr.msra.gmra.mxu0 %v4448_v36  ;;  %v843_v58 = vpop.f32.mrf.mxu1 }
 0x1e1   : > { %1608 = vmatpush2.xpose.msra.mxu1 %v4310_v1  ;;  %1477 = vmatprep.mubr.f32.mxu0 %v4449_v43  ;;  %v424_v1 = vpop.f32.mrf.mxu0 }
 0x1e2   : > { %1610 = vmatprep.subr.mxu1 %v3332_v63  ;;  %v834_v42 = vadd.f32 %v833_v40, %v424_v1 }
 0x1e3   : > { %v426_v37 = vpop.f32.mrf.mxu0 }
 0x1e4   : > { %1479 = vmatmul.mubr.f32.gmra.mxu0 %v4450_v53  ;;  %v836_v16 = vadd.f32 %v835_v51, %v426_v37 }
 0x1e5   : > { %1612 = vmatpush2.xpose.msra.mxu1 %v3341_v50  ;;  %1707 = vmatprep.mubr.f32.mxu0 %v2544_v34  ;;  %v440_v38 = vpop.f32.mrf.mxu0 }
 0x1e6   : > { %v842_v18 = vadd.f32 %v841_v27, %v440_v38  ;;  %v1722_v38 = vsub.f32 %v3763_v56, %v1721_v7 }
 0x1e7   : > { %v442_v63 = vpop.f32.mrf.mxu0 }
 0x1e8   : > { %1616 = vmatmul.mubr.f32.vlgmr.msra.gmra.mxu1 %v4448_v36  ;;  %v844_v3 = vadd.f32 %v843_v58, %v442_v63  ;;  %v1723_v27 = vand.u32 4294901760, %v1722_v38 }
 0x1e9   : > { %1622 = vmatprep.mubr.f32.mxu1 %v4449_v43 }
 0x1ec   : > { %1624 = vmatmul.mubr.f32.gmra.mxu1 %v4450_v53  ;;  %v1712_v53 = vand.u32 4294901760, %v1711_v8 }
 0x1ed   : > { %1814 = vmatprep.mubr.f32.mxu1 %v2544_v34 }
 0x220   : > { %v1044_v62 = vpop.f32.mrf.mxu0 }
 0x221   : > { %v1045_v25 = vadd.f32 %v1044_v62, %v834_v42 }
 0x222   : > { %v1046_v50 = vpop.f32.mrf.mxu0 }
 0x223   : > { %v1047_v21 = vadd.f32 %v1046_v50, %v836_v16 }
 0x224   : > { %v1054_v46 = vpop.f32.mrf.mxu0 }
 0x225   : > { %v1055_v35 = vadd.f32 %v1054_v46, %v842_v18 }
 0x226   : > { %v1056_v23 = vpop.f32.mrf.mxu0 }
 0x227   : > { %v1057_v20 = vadd.f32 %v1056_v23, %v844_v3 }
 0x228   : > { %v1195_v29 = vpop.f32.mrf.mxu1 }
 0x229   : > { %v1196_v22 = vadd.f32 %v1195_v29, %v1045_v25 }
 0x22a   : > { %v1197_v44 = vpop.f32.mrf.mxu1 }
 0x22b   : > { %v1198_v9 = vadd.f32 %v1197_v44, %v1047_v21 }
 0x22c   : > { %v1207_v2 = vpop.f32.mrf.mxu1 }
 0x22d   : > { %v1208_v26 = vadd.f32 %v1207_v2, %v1055_v35 }
 0x22e   : > { %v1209_v31 = vpop.f32.mrf.mxu1 }
 0x22f   : > { %v1210_v54 = vadd.f32 %v1209_v31, %v1057_v20 }
 0x2a0   : > { %v1472_v32 = vpop.f32.mrf.mxu0 }
 0x2a1   : > { %v1473_v10 = vadd.f32 %v1472_v32, %v1196_v22 }
 0x2a2   : > { %v1474_v15 = vpop.f32.mrf.mxu0 }
 0x2a3   : > { %v1475_v30 = vadd.f32 %v1474_v15, %v1198_v9 }
 0x2a4   : > { %v1480_v4 = vpop.f32.mrf.mxu0 }
 0x2a5   : > { %v1481_v14 = vadd.f32 %v1480_v4, %v1208_v26 }
 0x2a6   : > { %v1482_v45 = vpop.f32.mrf.mxu0 }
 0x2a7   : > { %v1483_v19 = vadd.f32 %v1482_v45, %v1210_v54 }
 0x2a8   : > { %v1617_v17 = vpop.f32.mrf.mxu1 }
 0x2a9   : > { %v1618_v39 = vadd.f32 %v1617_v17, %v1473_v10 }
 0x2aa   : > { %v1619_v48 = vpop.f32.mrf.mxu1 }
 0x2ab   : > { %v1620_v55 = vadd.f32 %v1619_v48, %v1475_v30  ;;  %v3765_v28 = vand.u32 4294901760, %v1618_v39 }
 0x2ac   : > { %v1625_v59 = vpop.f32.mrf.mxu1 }
 0x2ad   : > { %v1671_v60 = vand.u32 4294901760, %v1620_v55  ;;  %v1626_v24 = vadd.f32 %v1625_v59, %v1481_v14  ;;  %v1777_v41 = vsub.f32 %v1618_v39, %v3765_v28 }
 0x2ae   : > { %v1627_v61 = vpop.f32.mrf.mxu1 }
 0x2af   : > { %v1771_v57 = vsub.f32 %v1620_v55, %v1671_v60  ;;  %v1669_v13 = vand.u32 4294901760, %v1626_v24  ;;  %v1628_v0 = vadd.f32 %v1627_v61, %v1483_v19  ;;  %v1778_v63 = vand.u32 4294901760, %v1777_v41 }
 0x2b1   : > { %v1765_v36 = vsub.f32 %v1626_v24, %v1669_v13  ;;  %v1667_v43 = vand.u32 4294901760, %v1628_v0  ;;  %v1772_v40 = vand.u32 4294901760, %v1771_v57  ;;  %v1779_v46 = vsub.f32 %v1777_v41, %v1778_v63 }
 0x2b3   : > { %v1766_v1 = vand.u32 4294901760, %v1765_v36  ;;  %v1759_v37 = vsub.f32 %v1628_v0, %v1667_v43  ;;  %1668 = vmatprep.subr.mxu0 %v1667_v43  ;;  %v1773_v58 = vsub.f32 %v1771_v57, %v1772_v40  ;;  %v1780_v44 = vand.u32 4294901760, %v1779_v46 }
 0x2b4   : > { %1670 = vmatpush1.msra.mxu0 %v1669_v13 }
 0x2b5   : > { %1672 = vmatprep.subr.mxu0 %v1671_v60  ;;  %v1760_v51 = vand.u32 4294901760, %v1759_v37  ;;  %v1767_v62 = vsub.f32 %v1765_v36, %v1766_v1  ;;  %v1774_v23 = vand.u32 4294901760, %v1773_v58 }
 0x2b6   : > { %1674 = vmatpush1.msra.mxu0 %v3765_v28 }
 0x2b7   : > { %1713 = vmatmul.mubr.f32.vlgmr.msra.gmra.mxu0 %v1712_v53  ;;  %1859 = vmatprep.subr.mxu0 %v1759_v37  ;;  %v1761_v50 = vsub.f32 %v1759_v37, %v1760_v51  ;;  %v1768_v33 = vand.u32 4294901760, %v1767_v62 }
 0x2b8   : > { %1862 = vmatpush1.msra.mxu0 %v1765_v36  ;;  %1718 = vmatprep.mubr.f32.mxu0 %v2544_v34 }
 0x2b9   : > { %1865 = vmatprep.subr.mxu0 %v1771_v57  ;;  %v1762_v29 = vand.u32 4294901760, %v1761_v50 }
 0x2ba   : > { %1868 = vmatpush1.msra.mxu0 %v1777_v41 }
 0x2bb   : > { %1724 = vmatmul.mubr.f32.gmra.mxu0 %v1723_v27  ;;  %1763 = vmatprep.subr.mxu1 %v1762_v29 }
 0x2bc   : > { %2036 = vmatprep.subr.mxu0 %v1760_v51  ;;  %1769 = vmatpush1.msra.mxu1 %v1768_v33 }
 0x2bd   : > { %1775 = vmatprep.subr.mxu1 %v1774_v23  ;;  %1901 = vmatprep.mubr.f32.mxu0 %v2544_v34 }
 0x2be   : > { %1781 = vmatpush1.msra.mxu1 %v1780_v44 }
 0x2bf   : > { %1816 = vmatmul.mubr.f32.vlgmr.msra.gmra.mxu1 %v3754_v6  ;;  %1904 = vmatmul.mubr.f32.vlgmr.msra.gmra.mxu0 %v3757_v5 }
 0x2c0   : > { %1947 = vmatprep.subr.mxu1 %v1667_v43  ;;  %2040 = vmatpush1.msra.mxu0 %v1766_v1 }
 0x2c1   : > { %1949 = vmatpush1.msra.mxu1 %v1669_v13  ;;  %2044 = vmatprep.subr.mxu0 %v1772_v40 }
 0x2c2   : > { %1951 = vmatprep.subr.mxu1 %v1671_v60  ;;  %2048 = vmatpush1.msra.mxu0 %v1778_v63 }
 0x2c3   : > { %1821 = vmatprep.mubr.f32.mxu1 %v2544_v34  ;;  %1953 = vmatpush1.msra.mxu1 %v3765_v28 }
 0x2c4   : > { %1823 = vmatmul.mubr.f32.gmra.mxu1 %v3759_v11  ;;  %2125 = vmatprep.subr.mxu1 %v1667_v43 }
 0x2c5   : > { %1909 = vmatprep.mubr.f32.mxu0 %v2544_v34  ;;  %1986 = vmatprep.mubr.f32.mxu1 %v2544_v34 }
 0x2c6   : > { %1912 = vmatmul.mubr.f32.gmra.mxu0 %v3763_v56 }
 0x2c7   : > { %2081 = vmatprep.mubr.f32.mxu0 %v2544_v34 }
 0x2c8   : > { %1990 = vmatmul.mubr.f32.vlgmr.msra.gmra.mxu1 %v1710_v49 }
 0x2c9   : > { %2127 = vmatpush1.msra.mxu1 %v1669_v13  ;;  %1995 = vmatprep.mubr.f32.mxu1 %v2544_v34 }
 0x2ca   : > { %2129 = vmatprep.subr.mxu1 %v1671_v60  ;;  %2083 = vmatmul.mubr.f32.vlgmr.msra.gmra.mxu0 %v3754_v6 }
 0x2cb   : > { %2131 = vmatpush1.msra.mxu1 %v3765_v28  ;;  %2088 = vmatprep.mubr.f32.mxu0 %v2544_v34 }
 0x2cc   : > { %1999 = vmatmul.mubr.f32.gmra.mxu1 %v1721_v7 }
 0x2cd   : > { %2164 = vmatprep.mubr.f32.mxu1 %v2544_v34 }
 0x2ce   : > { %2090 = vmatmul.mubr.f32.gmra.mxu0 %v3759_v11 }
 0x2d0   : > { %2166 = vmatmul.mubr.f32.vlgmr.msra.gmra.mxu1 %v3754_v6 }
 0x2d1   : > { %2171 = vmatprep.mubr.f32.mxu1 %v2544_v34 }
 0x2d4   : > { %2173 = vmatmul.mubr.f32.gmra.mxu1 %v3759_v11 }
 0x377   : > { %v1714_v52 = vpop.f32.mrf.mxu0 }
 0x379   : > { %v1716_v32 = vpop.f32.mrf.mxu0 }
 0x37b   : > { %v1725_v42 = vpop.f32.mrf.mxu0 }
 0x37d   : > { %v1727_v47 = vpop.f32.mrf.mxu0 }
 0x37f   : > { %v1817_v2 = vpop.f32.mrf.mxu1  ;;  %v1905_v15 = vpop.f32.mrf.mxu0 }
 0x380   : > { %v1818_v12 = vadd.f32 %v1817_v2, %v1714_v52 }
 0x381   : > { %v1819_v16 = vpop.f32.mrf.mxu1  ;;  %v1907_v25 = vpop.f32.mrf.mxu0 }
 0x382   : > { %v1820_v22 = vadd.f32 %v1819_v16, %v1716_v32  ;;  %v1906_v6 = vadd.f32 %v1905_v15, %v1818_v12 }
 0x384   : > { %v1824_v18 = vpop.f32.mrf.mxu1  ;;  %v1908_v9 = vadd.f32 %v1907_v25, %v1820_v22 }
 0x385   : > { %v1825_v5 = vadd.f32 %v1824_v18, %v1725_v42 }
 0x386   : > { %v1826_v21 = vpop.f32.mrf.mxu1  ;;  %v1913_v3 = vpop.f32.mrf.mxu0 }
 0x387   : > { %v1827_v10 = vadd.f32 %v1826_v21, %v1727_v47  ;;  %v1914_v26 = vadd.f32 %v1913_v3, %v1825_v5 }
 0x388   : > { %v1915_v31 = vpop.f32.mrf.mxu0  ;;  %v1991_v4 = vpop.f32.mrf.mxu1 }
 0x389   : > { %v1992_v11 = vadd.f32 %v1991_v4, %v1906_v6  ;;  %v1916_v48 = vadd.f32 %v1915_v31, %v1827_v10 }
 0x38a   : > { %v1993_v34 = vpop.f32.mrf.mxu1  ;;  %v2084_v35 = vpop.f32.mrf.mxu0 }
 0x38b   : > { %v1994_v30 = vadd.f32 %v1993_v34, %v1908_v9  ;;  %v2085_v49 = vadd.f32 %v2084_v35, %v1992_v11 }
 0x38c   : > { %v2000_v17 = vpop.f32.mrf.mxu1  ;;  %v2086_v20 = vpop.f32.mrf.mxu0 }
 0x38d   : > { %v2001_v54 = vadd.f32 %v2000_v17, %v1914_v26  ;;  %v2087_v55 = vadd.f32 %v2086_v20, %v1994_v30 }
 0x38e   : > { %v2002_v39 = vpop.f32.mrf.mxu1  ;;  %v2091_v45 = vpop.f32.mrf.mxu0 }
 0x38f   : > { %v2003_v56 = vadd.f32 %v2002_v39, %v1916_v48  ;;  %v2092_v60 = vadd.f32 %v2091_v45, %v2001_v54 }
 0x390   : > { %v2167_v14 = vpop.f32.mrf.mxu1  ;;  %v2093_v59 = vpop.f32.mrf.mxu0 }
 0x391   : > { %v2168_v28 = vadd.f32 %v2167_v14, %v2085_v49  ;;  %v2094_v8 = vadd.f32 %v2093_v59, %v2003_v56 }
 0x392   : > { %v2169_v19 = vpop.f32.mrf.mxu1 }
 0x393   : > { %2179 = vst [vmem:[%s215_s23] sm:$0xff] %v2168_v28  ;;  %v2170_v24 = vadd.f32 %v2169_v19, %v2087_v55 }
 0x394   : > { %v2174_v61 = vpop.f32.mrf.mxu1 }
 0x395   : > { %2180 = vst [vmem:[%s215_s23 + $0x8] sm:$0xff] %v2170_v24  ;;  %v2175_v57 = vadd.f32 %v2174_v61, %v2092_v60 }
 0x396   : > { %v2176_v13 = vpop.f32.mrf.mxu1 }
 0x397   : > { %2181 = vst [vmem:[%s215_s23 + $0x10] sm:$0xff] %v2175_v57  ;;  %v2177_v0 = vadd.f32 %v2176_v13, %v2094_v8 }
 0x399   : > { %2182 = vst [vmem:[%s215_s23 + $0x18] sm:$0xff] %v2177_v0 }
 0x39a   : > { %2476 = shalt.err (!%p2473_p0)
}
 0x39b   : > { %s2477_s28 = scalar_lea.hbm %s3803_s20, 512  ;;  %s2481_s5 = scalar_lea.hbm %s3851_s3, 1024 }
 0x39c   : > { %p2478_p2 = scmp.ne.s32.totalorder %s3803_s20, %s2477_s28  ;;  %p2482_p6 = scmp.lt.s32.totalorder %s3803_s20, %s3851_s3 }
 0x39d   : > { %p2483_p13 = scmp.lt.s32.totalorder %s2481_s5, %s2477_s28 }
 0x39e   : > { %p2479_p3 = pnand %p2478_p2, %p4451_p12 }
 0x39f   : > { %p2484_p11 = por %p2483_p13, %p2482_p6 }
 0x3a0   : > { %p2480_p7 = pneg %p2479_p3 }
 0x3a2   : > { %p2485_p4 = pnand %p2484_p11, %p2480_p7 }
 0x3a4   : > { %2488 = shalt.err (!%p2485_p4)
}
 0x3a5   : > { %s2546_s26 = smov 256   ;;  %s2547_s8 = smov 16  }
 0x3a6   : > { %2319 = dma.vmem_to_hbm [thread:$0]  (%p4451_p12), %s3798_s17, 512, %s3803_s20, %s3807_s16, %s2546_s26, %s2546_s26, %s2547_s8  }
 0x3a7 PF: > { %s2212_s9 = sand.u32 1, %s2523_s12   ;;  %p4452_p8 = scmp.ne.s32.totalorder %s4070_s25, 0 }
 0x3a8   : > { %p4453_p9 = scmp.ge.s32.totalorder %s2535_s15, 2  ;;  %s2213_s23 = scalar_lea.sflag [#allocation4], %s2212_s9 }
 0x3aa   : > { %p2333_p10 = pnand %p4453_p9, %p4452_p8 }
 0x3ac   : > { %p2334_p1 = pneg %p2333_p10 }
 0x3ae   : > { %2518 = dma.done.wait (%p2334_p1), %s2213_s23, 512  }
 0x3af   : > { %2520 = vsyncadd (%p2334_p1), %s2213_s23, 4294966784  ;;  %p15_p5 = scmp.ge.s32.totalorder %s2593_s18, 4   ;;  %s4454_s12 = smov %s2527_s13 }
 0x3b0   : > { %s4455_s13 = smov %s2531_s14  ;;  %s4456_s14 = smov %s2605_s21 }
 0x3b1   : > { %s4457_s15 = smov %s2593_s18  ;;  %17 = sbr.rel (!%p15_p5) target bundleno = 7 (0x7), region = 84 }
 0x3b6   :  { %2218 = vsyncpa [#allocation3], 1 }
 0x3b7   :  { %2220 = vsyncpa [#allocation3 + $0x1], 1 }
 0x3b8   :  { %2221 = vsyncpa [#allocation6], 1 }
 0x3b9   :  { %2222 = vsyncpa [#allocation4], 1 }
 0x3ba   :  { %2224 = vsyncpa [#allocation4 + $0x1], 1 }

</bundles_post_ra>
